<compile_context>
chip_gen: v7x
topology: tpu7x:2x2x1
jax: 0.10.0
libtpu: 0.0.40
codegen_flags: <defaults>
</compile_context>

<pallas_src>
import functools

import numpy as np
import jax
import jax.numpy as jnp
from jax.experimental import pallas as pl
from jax.experimental.pallas import tpu as pltpu

_LANE = 128     # lane width: pad feature dims per layer to a multiple of this
_TILE = 256     # MXU-aligned node tile (256 matches v6e/v7x MXU; fine on v5e)


def _round_up(x, m):
    return ((x + m - 1) // m) * m


def _tpu_vmem_budget():
    """(vmem_limit_bytes, fused_path_cutoff_bytes), generation aware."""
    cap = 64 * 1024 * 1024
    try:
        info = pltpu.get_tpu_info()
        cap = int(getattr(info, "vmem_capacity_bytes", cap))
    except Exception:
        pass
    if cap >= 96 * 1024 * 1024:           # v5e / v6e: 128 MiB physical VMEM
        return 100 * 1024 * 1024, 80 * 1024 * 1024
    return 40 * 1024 * 1024, 26 * 1024 * 1024   # v7x: 64 MiB physical VMEM


# ---------------------------------------------------------------------------
# Tiled, block-sparse per-layer kernel (large-graph path)
# ---------------------------------------------------------------------------
def _sage_tiled_kernel(blk_idx_ref, blk_cnt_ref,          # scalar prefetch (SMEM)
                       a_ref, xk_ref, xi_ref, wl_ref, wr_ref, b_ref,
                       o_ref, acc_ref, self_ref, *, apply_relu):
    i = pl.program_id(0)
    k = pl.program_id(1)

    @pl.when(k == 0)
    def _init():
        acc_ref[...] = jnp.zeros_like(acc_ref)
        # Self term + bias once per row block, overlapped with the first
        # aggregation step (load-balances the finalize step).
        self_ref[...] = (jnp.dot(xi_ref[...], wr_ref[...],
                                 preferred_element_type=jnp.float32)
                         + b_ref[...])

    # Accumulate the mean-aggregation A @ X only over non-zero A blocks of this
    # row block (block-sparse skip of padded / empty tiles; padded entries in
    # blk_idx repeat the previous index so their DMAs are deduped).
    @pl.when(k < blk_cnt_ref[i])
    def _accumulate():
        acc_ref[...] += jnp.dot(a_ref[...], xk_ref[...],
                                preferred_element_type=jnp.float32)

    # Finalize once per row block: Wl on the aggregated term, add self term,
    # ReLU in f32, lane-dense bf16 store.
    @pl.when(k == pl.num_programs(1) - 1)
    def _finalize():
        agg = acc_ref[...].astype(jnp.bfloat16)
        out = (jnp.dot(agg, wl_ref[...], preferred_element_type=jnp.float32)
               + self_ref[...])
        if apply_relu:
            out = jnp.maximum(out, 0.0)
        o_ref[...] = out.astype(o_ref.dtype)


def sage_layer_tiled(a, blk_idx, blk_cnt, x, wl_t, wr_t, b, *,
                     vmem_limit_bytes, tile_m=_TILE, tile_k=_TILE,
                     apply_relu=True):
    """One SAGEConv layer, tiled/pipelined with block-sparse A skipping."""
    n_pad, fp_in = x.shape
    fp_out = wl_t.shape[1]
    ni = n_pad // tile_m
    max_k = blk_idx.shape[1]

    kernel = functools.partial(_sage_tiled_kernel, apply_relu=apply_relu)
    grid_spec = pltpu.PrefetchScalarGridSpec(
        num_scalar_prefetch=2,
        grid=(ni, max_k),
        in_specs=[
            pl.BlockSpec((tile_m, tile_k), lambda i, k, bi, bc: (i, bi[i, k])),  # A tile
            pl.BlockSpec((tile_k, fp_in),  lambda i, k, bi, bc: (bi[i, k], 0)),  # X (neigh)
            pl.BlockSpec((tile_m, fp_in),  lambda i, k, bi, bc: (i, 0)),         # X (self)
            pl.BlockSpec((fp_in, fp_out),  lambda i, k, bi, bc: (0, 0)),         # W_l^T
            pl.BlockSpec((fp_in, fp_out),  lambda i, k, bi, bc: (0, 0)),         # W_r^T
            pl.BlockSpec((1, fp_out),      lambda i, k, bi, bc: (0, 0)),         # bias
        ],
        out_specs=pl.BlockSpec((tile_m, fp_out), lambda i, k, bi, bc: (i, 0)),
        scratch_shapes=[pltpu.VMEM((tile_m, fp_in), jnp.float32),    # A@X accum
                        pltpu.VMEM((tile_m, fp_out), jnp.float32)],  # self term
    )
    return pl.pallas_call(
        kernel,
        out_shape=jax.ShapeDtypeStruct((n_pad, fp_out), jnp.bfloat16),
        grid_spec=grid_spec,
        compiler_params=pltpu.CompilerParams(
            dimension_semantics=("parallel", "arbitrary"),
            vmem_limit_bytes=vmem_limit_bytes,
        ),
    )(blk_idx, blk_cnt, a, x, x, wl_t, wr_t, b)


# ---------------------------------------------------------------------------
# Fused whole-stack kernel (small-graph path: A + h resident in VMEM)
# ---------------------------------------------------------------------------
def _sage_fused_kernel(a_ref, x_ref, *rest, num_layers, apply_relu):
    # rest = (wl_0, wr_0, b_0, ..., wl_{L-1}, wr_{L-1}, b_{L-1}, o_ref)
    o_ref = rest[-1]
    param_refs = rest[:-1]
    a = a_ref[...]                     # A loaded once, reused by every layer
    h = x_ref[...]                     # h carried as a traced value (no VMEM
    for l in range(num_layers):        # store/load round trip per layer)
        wl_ref, wr_ref, b_ref = param_refs[3 * l:3 * l + 3]
        agg = jnp.dot(a, h, preferred_element_type=jnp.float32).astype(jnp.bfloat16)
        out = (jnp.dot(agg, wl_ref[...], preferred_element_type=jnp.float32)
               + jnp.dot(h, wr_ref[...], preferred_element_type=jnp.float32)
               + b_ref[...])
        if apply_relu:
            out = jnp.maximum(out, 0.0)
        h = out.astype(jnp.bfloat16)
    o_ref[...] = h                     # single lane-dense store at the end


def _full_spec(shape):
    nd = len(shape)
    return pl.BlockSpec(shape, lambda i, _nd=nd: (0,) * _nd)


def sage_stack_fused(a, x, wl_list, wr_list, b_list, *,
                     vmem_limit_bytes, apply_relu=True):
    n_pad = x.shape[0]
    num_layers = len(wl_list)
    f_out_last = wl_list[-1].shape[1]
    kernel = functools.partial(_sage_fused_kernel,
                               num_layers=num_layers, apply_relu=apply_relu)
    inputs = [a, x]
    in_specs = [_full_spec(a.shape), _full_spec(x.shape)]
    for l in range(num_layers):
        b2 = b_list[l].reshape(1, -1)
        inputs += [wl_list[l], wr_list[l], b2]
        in_specs += [_full_spec(wl_list[l].shape),
                     _full_spec(wr_list[l].shape),
                     _full_spec(b2.shape)]
    return pl.pallas_call(
        kernel,
        out_shape=jax.ShapeDtypeStruct((n_pad, f_out_last), jnp.bfloat16),
        grid=(1,),
        in_specs=in_specs,
        out_specs=_full_spec((n_pad, f_out_last)),
        compiler_params=pltpu.CompilerParams(
            dimension_semantics=("arbitrary",),
            vmem_limit_bytes=vmem_limit_bytes,
        ),
    )(*inputs)


# ---------------------------------------------------------------------------
# Host-side graph preprocessing (cached per graph)
# ---------------------------------------------------------------------------
_GRAPH_CACHE = {}


def build_aggregation(edge_index, num_nodes, n_pad, tile_m, tile_k):
    """Dense mean-aggregation operator A (bf16, padded) + block-sparsity table."""
    ei = np.asarray(jax.device_get(edge_index))
    cache_key = (ei.tobytes(), int(num_nodes), int(n_pad), int(tile_m), int(tile_k))
    hit = _GRAPH_CACHE.get(cache_key)
    if hit is not None:
        return hit

    src, dst = ei[0], ei[1]
    adj = np.zeros((n_pad, n_pad), dtype=np.float32)
    np.add.at(adj, (dst, src), 1.0)
    deg = adj.sum(axis=1, keepdims=True)
    inv = np.where(deg > 0.0, 1.0 / np.maximum(deg, 1.0), 0.0).astype(np.float32)
    a = adj * inv                                   # A[i, j] = 1/in_deg(i)

    ni, nk = n_pad // tile_m, n_pad // tile_k
    blk_nz = np.abs(a).reshape(ni, tile_m, nk, tile_k).sum(axis=(1, 3)) > 0.0
    counts = blk_nz.sum(axis=1).astype(np.int32)
    max_k = max(int(counts.max()) if counts.size else 0, 1)
    blk_idx = np.zeros((ni, max_k), dtype=np.int32)
    for i in range(ni):
        ks = np.nonzero(blk_nz[i])[0]
        if ks.size:
            blk_idx[i, :ks.size] = ks
            blk_idx[i, ks.size:] = ks[-1]   # repeat last valid index -> DMA dedupe
        else:
            blk_idx[i, :] = min(i, nk - 1)  # nothing computed for this row block

    result = (jnp.asarray(a, dtype=jnp.bfloat16),
              jnp.asarray(blk_idx), jnp.asarray(counts), max_k)
    _GRAPH_CACHE[cache_key] = result
    return result


def init_params(key, features):
    """Deterministic SAGEConv params: (W_l^T, W_r^T, b) per layer, [F_in, F_out]."""
    params = []
    for i in range(len(features) - 1):
        f_in, f_out = features[i], features[i + 1]
        key, k1, k2, k3 = jax.random.split(key, 4)
        wl_t = jax.random.normal(k1, (f_in, f_out), jnp.float32) * 0.1
        wr_t = jax.random.normal(k2, (f_in, f_out), jnp.float32) * 0.1
        b = jax.random.normal(k3, (f_out,), jnp.float32) * 0.1
        params.append((wl_t, wr_t, b))
    return params


def _pad_params(params, feats_pad):
    """Per-layer padding: each F_in/F_out rounded to its own 128 multiple."""
    wl_list, wr_list, b_list = [], [], []
    for l, (wl_t, wr_t, b) in enumerate(params):
        f_in, f_out = wl_t.shape
        fpi, fpo = feats_pad[l], feats_pad[l + 1]
        wl_list.append(jnp.pad(wl_t, ((0, fpi - f_in), (0, fpo - f_out))).astype(jnp.bfloat16))
        wr_list.append(jnp.pad(wr_t, ((0, fpi - f_in), (0, fpo - f_out))).astype(jnp.bfloat16))
        b_list.append(jnp.pad(b, (0, fpo - f_out)).astype(jnp.float32))
    return wl_list, wr_list, b_list


def _fused_vmem_estimate(n_pad, feats_pad, num_layers):
    a_bytes = n_pad * n_pad * 2
    x_bytes = n_pad * feats_pad[0] * 2
    out_bytes = n_pad * feats_pad[-1] * 2
    w_bytes = sum(2 * feats_pad[l] * feats_pad[l + 1] * 2 + feats_pad[l + 1] * 4
                  for l in range(num_layers))
    tmp_bytes = 3 * n_pad * max(feats_pad) * 4     # f32 intermediates per layer
    return 2 * (a_bytes + x_bytes + out_bytes + w_bytes) + tmp_bytes


# ---------------------------------------------------------------------------
# Forward passes
# ---------------------------------------------------------------------------
def gcn_custom_forward(x, edge_index, params, *, mode="auto"):
    """GCNcustom (layer_name='sageconv', act_fn=ReLU, eval mode) forward."""
    n, f_in = x.shape
    feats = [f_in] + [p[0].shape[1] for p in params]
    feats_pad = [_round_up(max(f, 1), _LANE) for f in feats]
    num_layers = len(params)
    n_pad = _round_up(max(n, 1), _TILE)

    vmem_limit, fused_cutoff = _tpu_vmem_budget()

    a_bf16, blk_idx, blk_cnt, _ = build_aggregation(edge_index, n, n_pad, _TILE, _TILE)
    wl_list, wr_list, b_list = _pad_params(params, feats_pad)
    x_pad = jnp.pad(x.astype(jnp.float32),
                    ((0, n_pad - n), (0, feats_pad[0] - f_in))).astype(jnp.bfloat16)

    if mode == "auto":
        est = _fused_vmem_estimate(n_pad, feats_pad, num_layers)
        mode = "fused" if est <= fused_cutoff else "tiled"

    if mode == "fused":
        h = sage_stack_fused(a_bf16, x_pad, wl_list, wr_list, b_list,
                             vmem_limit_bytes=vmem_limit)
    else:
        h = x_pad
        for l in range(num_layers):
            h = sage_layer_tiled(a_bf16, blk_idx, blk_cnt, h,
                                 wl_list[l], wr_list[l],
                                 b_list[l].reshape(1, -1),
                                 vmem_limit_bytes=vmem_limit,
                                 apply_relu=True)

    return h[:n, :feats[-1]].astype(jnp.float32)


def gcn_custom_reference(x, edge_index, params):
    """Pure-JAX reference with the same numerics (bf16 MXU inputs, f32 accum)."""
    n = x.shape[0]
    src, dst = edge_index[0], edge_index[1]
    adj = jnp.zeros((n, n), jnp.float32).at[dst, src].add(1.0)
    deg = adj.sum(axis=1, keepdims=True)
    a = jnp.where(deg > 0, adj / jnp.maximum(deg, 1.0), 0.0).astype(jnp.bfloat16)
    h = x.astype(jnp.bfloat16)
    for (wl_t, wr_t, b) in params:
        agg = jnp.dot(a, h, preferred_element_type=jnp.float32).astype(jnp.bfloat16)
        out = (jnp.dot(agg, wl_t.astype(jnp.bfloat16), preferred_element_type=jnp.float32)
               + jnp.dot(h, wr_t.astype(jnp.bfloat16), preferred_element_type=jnp.float32)
               + b)
        h = jnp.maximum(out, 0.0).astype(jnp.bfloat16)
    return h.astype(jnp.float32)


def lp_simple_classifier(x_nt1, x_nt2, edge_label_index):
    """LPsimple_classif: dot product of endpoint embeddings (plain JAX epilogue)."""
    return (x_nt1[edge_label_index[0]] * x_nt2[edge_label_index[1]]).sum(axis=-1)


# ---------------------------------------------------------------------------
if __name__ == "__main__":
    key = jax.random.PRNGKey(0)
    k_x1, k_p1, k_x2, k_p2 = jax.random.split(key, 4)

    # ---- Example 1: tiny ring graph -> fused whole-stack VMEM-resident path
    n1, feats1 = 8, [4, 32, 16]
    x1 = jax.random.normal(k_x1, (n1, feats1[0]), jnp.float32)
    idx1 = jnp.arange(n1, dtype=jnp.int32)
    ei1 = jnp.stack([jnp.concatenate([idx1, (idx1 + 1) % n1]),
                     jnp.concatenate([(idx1 + 1) % n1, idx1])])
    params1 = init_params(k_p1, feats1)

    out1 = jax.block_until_ready(gcn_custom_forward(x1, ei1, params1, mode="fused"))
    ref1 = jax.block_until_ready(gcn_custom_reference(x1, ei1, params1))
    assert out1.shape == (n1, feats1[-1])
    err1 = float(jnp.max(jnp.abs(out1 - ref1)))

    # link-prediction head (LPsimple_classif) on the embeddings, as in the module
    ell1 = jnp.stack([idx1, (idx1 + 2) % n1])
    pred1 = jax.block_until_ready(lp_simple_classifier(out1, out1, ell1))
    assert pred1.shape == (n1,)

    # ---- Example 2: larger banded graph -> tiled, block-sparse pipelined path
    n2, feats2 = 512, [64, 128, 64]
    x2 = jax.random.normal(k_x2, (n2, feats2[0]), jnp.float32)
    base = np.arange(n2)
    src2 = np.concatenate([(base + d) % n2 for d in (-2, -1, 1, 2)]).astype(np.int32)
    dst2 = np.concatenate([base] * 4).astype(np.int32)
    ei2 = jnp.stack([jnp.asarray(src2), jnp.asarray(dst2)])
    params2 = init_params(k_p2, feats2)

    out2 = jax.block_until_ready(gcn_custom_forward(x2, ei2, params2, mode="tiled"))
    ref2 = jax.block_until_ready(gcn_custom_reference(x2, ei2, params2))
    assert out2.shape == (n2, feats2[-1])
    err2 = float(jnp.max(jnp.abs(out2 - ref2)))

    # also exercise the generation-aware auto path (cached graph prep is reused)
    out2b = jax.block_until_ready(gcn_custom_forward(x2, ei2, params2, mode="auto"))
    err2b = float(jnp.max(jnp.abs(out2b - ref2)))

    assert err1 < 0.1 and err2 < 0.1 and err2b < 0.1, (err1, err2, err2b)
    print("KERNEL_OK")
</pallas_src>

<mosaic_0001>
module attributes {stable_mosaic.version = 11 : i64} {
  func.func @_sage_fused_kernel(%arg0: i32, %arg1: memref<256x256xbf16, #tpu.memory_space<vmem>>, %arg2: memref<256x128xbf16, #tpu.memory_space<vmem>>, %arg3: memref<128x128xbf16, #tpu.memory_space<vmem>>, %arg4: memref<128x128xbf16, #tpu.memory_space<vmem>>, %arg5: memref<1x128xf32, #tpu.memory_space<vmem>>, %arg6: memref<128x128xbf16, #tpu.memory_space<vmem>>, %arg7: memref<128x128xbf16, #tpu.memory_space<vmem>>, %arg8: memref<1x128xf32, #tpu.memory_space<vmem>>, %arg9: memref<256x128xbf16, #tpu.memory_space<vmem>>) attributes {dimension_semantics = [#tpu.dimension_semantics<arbitrary>], iteration_bounds = array<i64: 1>, scalar_prefetch = 0 : i64, scratch_operands = 0 : i64, tpu.core_type = #tpu.core_type<tc>, window_params = [{pipeline_mode = #tpu.pipeline_mode<synchronous>, transform_indices = @transform_0, window_bounds = array<i64: 256, 256>}, {pipeline_mode = #tpu.pipeline_mode<synchronous>, transform_indices = @transform_1, window_bounds = array<i64: 256, 128>}, {pipeline_mode = #tpu.pipeline_mode<synchronous>, transform_indices = @transform_2, window_bounds = array<i64: 128, 128>}, {pipeline_mode = #tpu.pipeline_mode<synchronous>, transform_indices = @transform_3, window_bounds = array<i64: 128, 128>}, {pipeline_mode = #tpu.pipeline_mode<synchronous>, transform_indices = @transform_4, window_bounds = array<i64: 1, 128>}, {pipeline_mode = #tpu.pipeline_mode<synchronous>, transform_indices = @transform_5, window_bounds = array<i64: 128, 128>}, {pipeline_mode = #tpu.pipeline_mode<synchronous>, transform_indices = @transform_6, window_bounds = array<i64: 128, 128>}, {pipeline_mode = #tpu.pipeline_mode<synchronous>, transform_indices = @transform_7, window_bounds = array<i64: 1, 128>}, {pipeline_mode = #tpu.pipeline_mode<synchronous>, transform_indices = @transform_8, window_bounds = array<i64: 256, 128>}]} {
    %c0 = arith.constant 0 : index
    %c0_0 = arith.constant 0 : index
    %0 = vector.load %arg1[%c0, %c0_0] : memref<256x256xbf16, #tpu.memory_space<vmem>>, vector<256x256xbf16>
    %c0_1 = arith.constant 0 : index
    %c0_2 = arith.constant 0 : index
    %1 = vector.load %arg2[%c0_1, %c0_2] : memref<256x128xbf16, #tpu.memory_space<vmem>>, vector<256x128xbf16>
    %cst = arith.constant dense<0.000000e+00> : vector<256x128xf32>
    %2 = tpu.matmul %0, %1, %cst {dimension_numbers = #tpu.dot_dimension_numbers<[1], [0], [0], [1], [0, 0, 1, 1], [], []>} : vector<256x256xbf16>, vector<256x128xbf16>, vector<256x128xf32> -> vector<256x128xf32>
    %3 = arith.truncf %2 : vector<256x128xf32> to vector<256x128xbf16>
    %c0_3 = arith.constant 0 : index
    %c0_4 = arith.constant 0 : index
    %4 = vector.load %arg3[%c0_3, %c0_4] : memref<128x128xbf16, #tpu.memory_space<vmem>>, vector<128x128xbf16>
    %cst_5 = arith.constant dense<0.000000e+00> : vector<256x128xf32>
    %5 = tpu.matmul %3, %4, %cst_5 {dimension_numbers = #tpu.dot_dimension_numbers<[1], [0], [0], [1], [0, 0, 1, 1], [], []>} : vector<256x128xbf16>, vector<128x128xbf16>, vector<256x128xf32> -> vector<256x128xf32>
    %c0_6 = arith.constant 0 : index
    %c0_7 = arith.constant 0 : index
    %6 = vector.load %arg4[%c0_6, %c0_7] : memref<128x128xbf16, #tpu.memory_space<vmem>>, vector<128x128xbf16>
    %cst_8 = arith.constant dense<0.000000e+00> : vector<256x128xf32>
    %7 = tpu.matmul %1, %6, %cst_8 {dimension_numbers = #tpu.dot_dimension_numbers<[1], [0], [0], [1], [0, 0, 1, 1], [], []>} : vector<256x128xbf16>, vector<128x128xbf16>, vector<256x128xf32> -> vector<256x128xf32>
    %8 = arith.addf %5, %7 : vector<256x128xf32>
    %c0_9 = arith.constant 0 : index
    %c0_10 = arith.constant 0 : index
    %9 = vector.load %arg5[%c0_9, %c0_10] : memref<1x128xf32, #tpu.memory_space<vmem>>, vector<1x128xf32>
    %10 = vector.broadcast %9 : vector<1x128xf32> to vector<256x128xf32>
    %11 = arith.addf %8, %10 : vector<256x128xf32>
    %cst_11 = arith.constant 0.000000e+00 : f32
    %12 = vector.broadcast %cst_11 : f32 to vector<256x128xf32>
    %13 = arith.maximumf %11, %12 : vector<256x128xf32>
    %14 = arith.truncf %13 : vector<256x128xf32> to vector<256x128xbf16>
    %cst_12 = arith.constant dense<0.000000e+00> : vector<256x128xf32>
    %15 = tpu.matmul %0, %14, %cst_12 {dimension_numbers = #tpu.dot_dimension_numbers<[1], [0], [0], [1], [0, 0, 1, 1], [], []>} : vector<256x256xbf16>, vector<256x128xbf16>, vector<256x128xf32> -> vector<256x128xf32>
    %16 = arith.truncf %15 : vector<256x128xf32> to vector<256x128xbf16>
    %c0_13 = arith.constant 0 : index
    %c0_14 = arith.constant 0 : index
    %17 = vector.load %arg6[%c0_13, %c0_14] : memref<128x128xbf16, #tpu.memory_space<vmem>>, vector<128x128xbf16>
    %cst_15 = arith.constant dense<0.000000e+00> : vector<256x128xf32>
    %18 = tpu.matmul %16, %17, %cst_15 {dimension_numbers = #tpu.dot_dimension_numbers<[1], [0], [0], [1], [0, 0, 1, 1], [], []>} : vector<256x128xbf16>, vector<128x128xbf16>, vector<256x128xf32> -> vector<256x128xf32>
    %c0_16 = arith.constant 0 : index
    %c0_17 = arith.constant 0 : index
    %19 = vector.load %arg7[%c0_16, %c0_17] : memref<128x128xbf16, #tpu.memory_space<vmem>>, vector<128x128xbf16>
    %cst_18 = arith.constant dense<0.000000e+00> : vector<256x128xf32>
    %20 = tpu.matmul %14, %19, %cst_18 {dimension_numbers = #tpu.dot_dimension_numbers<[1], [0], [0], [1], [0, 0, 1, 1], [], []>} : vector<256x128xbf16>, vector<128x128xbf16>, vector<256x128xf32> -> vector<256x128xf32>
    %21 = arith.addf %18, %20 : vector<256x128xf32>
    %c0_19 = arith.constant 0 : index
    %c0_20 = arith.constant 0 : index
    %22 = vector.load %arg8[%c0_19, %c0_20] : memref<1x128xf32, #tpu.memory_space<vmem>>, vector<1x128xf32>
    %23 = vector.broadcast %22 : vector<1x128xf32> to vector<256x128xf32>
    %24 = arith.addf %21, %23 : vector<256x128xf32>
    %cst_21 = arith.constant 0.000000e+00 : f32
    %25 = vector.broadcast %cst_21 : f32 to vector<256x128xf32>
    %26 = arith.maximumf %24, %25 : vector<256x128xf32>
    %27 = arith.truncf %26 : vector<256x128xf32> to vector<256x128xbf16>
    %c0_22 = arith.constant 0 : index
    %c0_23 = arith.constant 0 : index
    %28 = vector.load %arg9[%c0_22, %c0_23] : memref<256x128xbf16, #tpu.memory_space<vmem>>, vector<256x128xbf16>
    tpu.vector_store %arg9[%c0_22, %c0_23], %27 {strides = array<i32>} : memref<256x128xbf16, #tpu.memory_space<vmem>>, vector<256x128xbf16>,
    return
  }
  func.func @transform_0(%arg0: i32) -> (i32, i32) {
    %c0_i32 = arith.constant 0 : i32
    %c0_i32_0 = arith.constant 0 : i32
    %c0_i32_1 = arith.constant 0 : i32
    return %c0_i32, %c0_i32_0 : i32, i32
  }
  func.func @transform_1(%arg0: i32) -> (i32, i32) {
    %c0_i32 = arith.constant 0 : i32
    %c0_i32_0 = arith.constant 0 : i32
    %c0_i32_1 = arith.constant 0 : i32
    return %c0_i32, %c0_i32_0 : i32, i32
  }
  func.func @transform_2(%arg0: i32) -> (i32, i32) {
    %c0_i32 = arith.constant 0 : i32
    %c0_i32_0 = arith.constant 0 : i32
    %c0_i32_1 = arith.constant 0 : i32
    return %c0_i32, %c0_i32_0 : i32, i32
  }
  func.func @transform_3(%arg0: i32) -> (i32, i32) {
    %c0_i32 = arith.constant 0 : i32
    %c0_i32_0 = arith.constant 0 : i32
    %c0_i32_1 = arith.constant 0 : i32
    return %c0_i32, %c0_i32_0 : i32, i32
  }
  func.func @transform_4(%arg0: i32) -> (i32, i32) {
    %c0_i32 = arith.constant 0 : i32
    %c0_i32_0 = arith.constant 0 : i32
    %c0_i32_1 = arith.constant 0 : i32
    return %c0_i32, %c0_i32_0 : i32, i32
  }
  func.func @transform_5(%arg0: i32) -> (i32, i32) {
    %c0_i32 = arith.constant 0 : i32
    %c0_i32_0 = arith.constant 0 : i32
    %c0_i32_1 = arith.constant 0 : i32
    return %c0_i32, %c0_i32_0 : i32, i32
  }
  func.func @transform_6(%arg0: i32) -> (i32, i32) {
    %c0_i32 = arith.constant 0 : i32
    %c0_i32_0 = arith.constant 0 : i32
    %c0_i32_1 = arith.constant 0 : i32
    return %c0_i32, %c0_i32_0 : i32, i32
  }
  func.func @transform_7(%arg0: i32) -> (i32, i32) {
    %c0_i32 = arith.constant 0 : i32
    %c0_i32_0 = arith.constant 0 : i32
    %c0_i32_1 = arith.constant 0 : i32
    return %c0_i32, %c0_i32_0 : i32, i32
  }
  func.func @transform_8(%arg0: i32) -> (i32, i32) {
    %c0_i32 = arith.constant 0 : i32
    %c0_i32_0 = arith.constant 0 : i32
    %c0_i32_1 = arith.constant 0 : i32
    return %c0_i32, %c0_i32_0 : i32, i32
  }
}

</mosaic_0001>

<bundles_post_ra>
// kernel: tpu_custom_call.1
= control target key start
LH: loop header
LB: loop body
LE: loop exit
PB: predicated region body
PF: predicated region fallthrough
CT: control target
= control target key end

     0   :  { %13 = vsyncpa [#allocation3], 0  ;;  %s3565_s0 = inlined_call_operand.hbm [shape: bf16[256,256], index: 0, kind: input, shape index: {}]   ;;  %s3566_s1 = inlined_call_operand.hbm [shape: bf16[256,128], index: 1, kind: input, shape index: {}]   ;;  %s3567_s2 = inlined_call_operand.hbm [shape: bf16[128,128], index: 2, kind: input, shape index: {}]   ;;  %s3568_s3 = inlined_call_operand.hbm [shape: bf16[128,128], index: 3, kind: input, shape index: {}]   ;;  %s3569_s4 = inlined_call_operand.vmem [shape: f32[1,128], index: 4, kind: input, shape index: {}]   ;;  %s3570_s5 = inlined_call_operand.hbm [shape: bf16[128,128], index: 5, kind: input, shape index: {}]   ;;  %s3571_s6 = inlined_call_operand.hbm [shape: bf16[128,128], index: 6, kind: input, shape index: {}]   ;;  %s3572_s7 = inlined_call_operand.vmem [shape: f32[1,128], index: 7, kind: input, shape index: {}]   ;;  %s3573_s8 = inlined_call_operand.hbm [shape: bf16[256,128], index: 8, kind: output, shape index: {}]  }
   0x1   :  { %14 = vsyncpa [#allocation6], 0 }
   0x2   :  { %15 = vsyncpa [#allocation9], 0 }
   0x3   :  { %16 = vsyncpa [#allocation12], 0 }
   0x4   :  { %17 = vsyncpa [#allocation4], 0  ;;  %s3113_s27 = smov [#allocation5]   ;;  %s2949_s9 = scalar_lea.hbm %s3566_s1, 2048 }
   0x5   :  { %s35_s28 = sshll.u32 %s3113_s27, 4  ;;  %p2950_p0 = scmp.ne.s32.totalorder %s3566_s1, %s2949_s9  ;;  %s36_s28 = int_to_ptr.vmem [resolvable:$true] %s35_s28 }
   0x6   :  { %p2953_p1 = scmp.lt.u32.totalorder %s2949_s9, %s3566_s1 }
   0x8   :  { %p2955_p2 = pnand %p2953_p1, %p2950_p0 }
   0xa   :  { %2958 = shalt.err (!%p2955_p2)
}
   0xb   :  { %s2959_s14 = scalar_lea.vmem %s36_s28, 2048  ;;  %p2964_p4 = scmp.lt.s32.totalorder %s36_s28, %s36_s28 }
   0xc   :  { %p2960_p3 = scmp.ne.s32.totalorder %s36_s28, %s2959_s14  ;;  %p2965_p5 = scmp.lt.s32.totalorder %s2959_s14, %s2959_s14 }
   0xe   :  { %p2966_p6 = por %p2965_p5, %p2964_p4 }
  0x10   :  { %p2967_p7 = pnand %p2966_p6, %p2960_p3 }
  0x12   :  { %2970 = shalt.err (!%p2967_p7)
}
  0x13   :  { %s3114_s15 = smov 64   ;;  %s3115_s16 = smov 4  }
  0x14   :  { %41 = dma.hbm_to_vmem [thread:$0]  %s3566_s1, 2048, %s36_s28, [#allocation6], %s3114_s15, %s3114_s15, %s3115_s16  }
  0x15   :  { %s3116_s19 = smov [#allocation8]   ;;  %s3117_s21 = smov [#allocation2]  }
  0x16   :  { %s59_s20 = sshll.u32 %s3116_s19, 4  ;;  %s23_s22 = sshll.u32 %s3117_s21, 4  ;;  %s60_s20 = int_to_ptr.vmem [resolvable:$true] %s59_s20  ;;  %s24_s22 = int_to_ptr.vmem [resolvable:$true] %s23_s22 }
  0x17   :  { %s2971_s25 = scalar_lea.hbm %s3568_s3, 1024 }
  0x18   :  { %p2972_p8 = scmp.ne.s32.totalorder %s3568_s3, %s2971_s25  ;;  %p2975_p9 = scmp.lt.u32.totalorder %s2971_s25, %s3568_s3 }
  0x1a   :  { %p2977_p10 = pnand %p2975_p9, %p2972_p8 }
  0x1c   :  { %2980 = shalt.err (!%p2977_p10)
}
  0x1d   :  { %s2981_s1 = scalar_lea.vmem %s60_s20, 1024  ;;  %p2986_p12 = scmp.lt.s32.totalorder %s60_s20, %s60_s20 }
  0x1e   :  { %p2982_p11 = scmp.ne.s32.totalorder %s60_s20, %s2981_s1  ;;  %p2987_p13 = scmp.lt.s32.totalorder %s2981_s1, %s2981_s1 }
  0x20   :  { %p2988_p0 = por %p2987_p13, %p2986_p12 }
  0x22   :  { %p2989_p1 = pnand %p2988_p0, %p2982_p11 }
  0x24   :  { %2992 = shalt.err (!%p2989_p1)
}
  0x25   :  { %65 = dma.hbm_to_vmem [thread:$0]  %s3568_s3, 1024, %s60_s20, [#allocation9], %s3114_s15, %s3114_s15, %s3115_s16  }
  0x26   :  { %s2993_s12 = scalar_lea.hbm %s3565_s0, 4096 }
  0x27   :  { %p2994_p2 = scmp.ne.s32.totalorder %s3565_s0, %s2993_s12  ;;  %p2997_p3 = scmp.lt.u32.totalorder %s2993_s12, %s3565_s0 }
  0x29   :  { %p2999_p4 = pnand %p2997_p3, %p2994_p2 }
  0x2b   :  { %3002 = shalt.err (!%p2999_p4)
}
  0x2c   :  { %s3003_s19 = scalar_lea.vmem %s24_s22, 4096  ;;  %p3008_p6 = scmp.lt.s32.totalorder %s24_s22, %s24_s22 }
  0x2d   :  { %p3004_p5 = scmp.ne.s32.totalorder %s24_s22, %s3003_s19  ;;  %p3009_p7 = scmp.lt.s32.totalorder %s3003_s19, %s3003_s19 }
  0x2f   :  { %p3010_p8 = por %p3009_p7, %p3008_p6 }
  0x31   :  { %p3011_p9 = pnand %p3010_p8, %p3004_p5 }
  0x33   :  { %3014 = shalt.err (!%p3011_p9)
}
  0x34   :  { %s3118_s3 = smov 128   ;;  %s3119_s20 = smov 8  }
  0x35   :  { %29 = dma.hbm_to_vmem [thread:$0]  %s3565_s0, 4096, %s24_s22, [#allocation3], %s3118_s3, %s3118_s3, %s3119_s20  }
  0x36   :  { %s3120_s24 = smov [#allocation7]   ;;  %s3121_s26 = smov [#allocation10]  }
  0x37   :  { %s47_s25 = sshll.u32 %s3120_s24, 4  ;;  %s73_s27 = sshll.u32 %s3121_s26, 4  ;;  %s48_s25 = int_to_ptr.vmem [resolvable:$true] %s47_s25  ;;  %s74_s27 = int_to_ptr.vmem [resolvable:$true] %s73_s27 }
  0x38   :  { %s3015_s1 = scalar_lea.hbm %s3567_s2, 1024 }
  0x39   :  { %p3016_p10 = scmp.ne.s32.totalorder %s3567_s2, %s3015_s1  ;;  %p3019_p11 = scmp.lt.u32.totalorder %s3015_s1, %s3567_s2 }
  0x3b   :  { %p3021_p12 = pnand %p3019_p11, %p3016_p10 }
  0x3d   :  { %3024 = shalt.err (!%p3021_p12)
}
  0x3e   :  { %s3025_s0 = scalar_lea.vmem %s48_s25, 1024  ;;  %p3030_p0 = scmp.lt.s32.totalorder %s48_s25, %s48_s25 }
  0x3f   :  { %p3026_p13 = scmp.ne.s32.totalorder %s48_s25, %s3025_s0  ;;  %p3031_p1 = scmp.lt.s32.totalorder %s3025_s0, %s3025_s0 }
  0x41   :  { %p3032_p2 = por %p3031_p1, %p3030_p0 }
  0x43   :  { %p3033_p3 = pnand %p3032_p2, %p3026_p13 }
  0x45   :  { %3036 = shalt.err (!%p3033_p3)
}
  0x46   :  { %53 = dma.hbm_to_vmem [thread:$0]  %s3567_s2, 1024, %s48_s25, [#allocation6], %s3114_s15, %s3114_s15, %s3115_s16  }
  0x47   :  { %s3037_s17 = scalar_lea.hbm %s3570_s5, 1024 }
  0x48   :  { %p3038_p4 = scmp.ne.s32.totalorder %s3570_s5, %s3037_s17  ;;  %p3041_p5 = scmp.lt.u32.totalorder %s3037_s17, %s3570_s5 }
  0x4a   :  { %p3043_p6 = pnand %p3041_p5, %p3038_p4 }
  0x4c   :  { %3046 = shalt.err (!%p3043_p6)
}
  0x4d   :  { %s3047_s21 = scalar_lea.vmem %s74_s27, 1024  ;;  %p3052_p8 = scmp.lt.s32.totalorder %s74_s27, %s74_s27 }
  0x4e   :  { %p3048_p7 = scmp.ne.s32.totalorder %s74_s27, %s3047_s21  ;;  %p3053_p9 = scmp.lt.s32.totalorder %s3047_s21, %s3047_s21 }
  0x50   :  { %p3054_p10 = por %p3053_p9, %p3052_p8 }
  0x52   :  { %p3055_p11 = pnand %p3054_p10, %p3048_p7 }
  0x54   :  { %3058 = shalt.err (!%p3055_p11)
}
  0x55   :  { %79 = dma.hbm_to_vmem [thread:$0]  %s3570_s5, 1024, %s74_s27, [#allocation9], %s3114_s15, %s3114_s15, %s3115_s16  }
  0x56   :  { %s3122_s24 = smov [#allocation11]   ;;  %s3059_s30 = scalar_lea.hbm %s3571_s6, 1024 }
  0x57   :  { %s85_s25 = sshll.u32 %s3122_s24, 4  ;;  %p3060_p12 = scmp.ne.s32.totalorder %s3571_s6, %s3059_s30  ;;  %s86_s25 = int_to_ptr.vmem [resolvable:$true] %s85_s25 }
  0x58   :  { %p3063_p13 = scmp.lt.u32.totalorder %s3059_s30, %s3571_s6 }
  0x5a   :  { %p3065_p0 = pnand %p3063_p13, %p3060_p12 }
  0x5c   :  { %3068 = shalt.err (!%p3065_p0)
}
  0x5d   :  { %s3069_s11 = scalar_lea.vmem %s86_s25, 1024  ;;  %p3074_p2 = scmp.lt.s32.totalorder %s86_s25, %s86_s25 }
  0x5e   :  { %p3070_p1 = scmp.ne.s32.totalorder %s86_s25, %s3069_s11  ;;  %p3075_p3 = scmp.lt.s32.totalorder %s3069_s11, %s3069_s11 }
  0x60   :  { %p3076_p4 = por %p3075_p3, %p3074_p2 }
  0x62   :  { %p3077_p5 = pnand %p3076_p4, %p3070_p1 }
  0x64   :  { %3080 = shalt.err (!%p3077_p5)
}
  0x65   :  { %91 = dma.hbm_to_vmem [thread:$0]  %s3571_s6, 1024, %s86_s25, [#allocation12], %s3114_s15, %s3114_s15, %s3115_s16  }
  0x66   :  { %3103 = dma.done.wait [#allocation3], 4096  }
  0x67   :  { %3104 = vsyncadd [#allocation3], 4294963200 }
  0x68   :  { %3105 = dma.done.wait [#allocation6], 3072  }
  0x69   :  { %3106 = vsyncadd [#allocation6], 4294964224 }
  0x6a   :  { %3107 = dma.done.wait [#allocation9], 2048  }
  0x6b   :  { %3108 = vsyncadd [#allocation9], 4294965248 }
  0x6c   :  { %3109 = dma.done.wait [#allocation12], 1024  }
  0x6d   :  { %3110 = vsyncadd [#allocation12], 4294966272  ;;  %v3256_v0 = vld [vmem:[#allocation5 + $0x40] sm:$0xff]   ;;  %v3259_v2 = vld [vmem:[#allocation5 + $0x48] sm:$0xff]  }
  0x6e   :  { %v2854_v1 = vld [vmem:[#allocation5] sm:$0xff]   ;;  %2266 = vmatprep.subr.bf16.mxu0 %v3256_v0  ;;  %v3261_v3 = vld [vmem:[#allocation5 + $0x8] sm:$0xff]   ;;  %v3264_v4 = vld [vmem:[#allocation5 + $0x50] sm:$0xff]  }
  0x6f   :  { %2267 = vmatpush3.bf16.msra.mxu0 %v2854_v1  ;;  %2602 = vmatprep.mubr.bf16.mxu1 %v2854_v1  ;;  %v3267_v5 = vld [vmem:[#allocation5 + $0x10] sm:$0xff]   ;;  %v3270_v6 = vld [vmem:[#allocation5 + $0x58] sm:$0xff]   ;;  %v3276_v8 = vld [vmem:[#allocation5 + $0x60] sm:$0xff]  }
  0x70   :  { %2268 = vmatprep.subr.bf16.mxu0 %v3259_v2  ;;  %v3273_v7 = vld [vmem:[#allocation5 + $0x18] sm:$0xff]   ;;  %v3279_v9 = vld [vmem:[#allocation5 + $0x20] sm:$0xff]   ;;  %v3282_v10 = vld [vmem:[#allocation5 + $0x68] sm:$0xff]  }
  0x71   :  { %v3284_v11 = vld [vmem:[#allocation2 + $0x4] ss:$8 sps:$4 sm:$0xff]   ;;  %v3291_v13 = vld [vmem:[#allocation5 + $0x70] sm:$0xff]   ;;  %v3297_v15 = vld [vmem:[#allocation5 + $0x78] sm:$0xff]  }
  0x72   :  { %v3287_v12 = vld [vmem:[#allocation5 + $0x28] sm:$0xff]   ;;  %465 = vmatprep.mubr.bf16.mxu0 %v3284_v11  ;;  %v3294_v14 = vld [vmem:[#allocation5 + $0x30] sm:$0xff]   ;;  %v3300_v16 = vld [vmem:[#allocation5 + $0x38] sm:$0xff]  }
  0x73   :  { %2269 = vmatpush3.bf16.msra.mxu0 %v3261_v3  ;;  %v3303_v17 = vld [vmem:[#allocation2] ss:$8 sps:$4 sm:$0xff]   ;;  %v3306_v18 = vld [vmem:[#allocation2 + $0x14] ss:$8 sps:$4 sm:$0xff]   ;;  %v3310_v19 = vld [vmem:[#allocation2 + $0x10] ss:$8 sps:$4 sm:$0xff]  }
  0x74   :  { %2270 = vmatprep.subr.bf16.mxu0 %v3264_v4  ;;  %v3312_v20 = vld [vmem:[#allocation2 + $0x24] ss:$8 sps:$4 sm:$0xff]   ;;  %v2919_v23 = vld [vmem:[#allocation8 + $0x10] sm:$0xff]   ;;  %v3316_v24 = vld [vmem:[#allocation2 + $0x20] ss:$8 sps:$4 sm:$0xff]  }
  0x75   :  { %v2917_v21 = vld [vmem:[#allocation8] sm:$0xff]   ;;  %v2918_v22 = vld [vmem:[#allocation8 + $0x8] sm:$0xff]   ;;  %v2920_v25 = vld [vmem:[#allocation8 + $0x18] sm:$0xff]  }
  0x76   :  { %2586 = vmatprep.subr.bf16.mxu1 %v2917_v21  ;;  %v3318_v26 = vld [vmem:[#allocation2 + $0x34] ss:$8 sps:$4 sm:$0xff]   ;;  %v2921_v27 = vld [vmem:[#allocation8 + $0x20] sm:$0xff]   ;;  %v3322_v28 = vld [vmem:[#allocation2 + $0x30] ss:$8 sps:$4 sm:$0xff]  }
  0x77   :  { %2271 = vmatpush3.bf16.msra.mxu0 %v3267_v5  ;;  %2587 = vmatpush3.bf16.msra.mxu1 %v2917_v21  ;;  %v2922_v29 = vld [vmem:[#allocation8 + $0x28] sm:$0xff]   ;;  %v2923_v31 = vld [vmem:[#allocation8 + $0x30] sm:$0xff]   ;;  %v2924_v33 = vld [vmem:[#allocation8 + $0x38] sm:$0xff]  }
  0x78   :  { %2272 = vmatprep.subr.bf16.mxu0 %v3270_v6  ;;  %2588 = vmatprep.subr.bf16.mxu1 %v2918_v22  ;;  %v3324_v30 = vld [vmem:[#allocation2 + $0x44] ss:$8 sps:$4 sm:$0xff]   ;;  %v3328_v32 = vld [vmem:[#allocation2 + $0x40] ss:$8 sps:$4 sm:$0xff]   ;;  %v3330_v34 = vld [vmem:[#allocation2 + $0x54] ss:$8 sps:$4 sm:$0xff]  }
  0x79   :  { %v2925_v35 = vld [vmem:[#allocation7] sm:$0xff]   ;;  %v3334_v36 = vld [vmem:[#allocation2 + $0x50] ss:$8 sps:$4 sm:$0xff]   ;;  %v2926_v37 = vld [vmem:[#allocation7 + $0x8] sm:$0xff]  }
  0x7a   :  { %v3336_v38 = vld [vmem:[#allocation2 + $0x64] ss:$8 sps:$4 sm:$0xff]   ;;  %v2927_v39 = vld [vmem:[#allocation7 + $0x10] sm:$0xff]   ;;  %v3342_v40 = vld [vmem:[#allocation2 + $0x60] ss:$8 sps:$4 sm:$0xff]  }
  0x7b   :  { %2273 = vmatpush3.bf16.msra.mxu0 %v3273_v7  ;;  %2589 = vmatpush3.bf16.msra.mxu1 %v2918_v22  ;;  %v2928_v41 = vld [vmem:[#allocation7 + $0x18] sm:$0xff]   ;;  %v3352_v44 = vld [vmem:[#allocation2 + $0x84] ss:$8 sps:$4 sm:$0xff]   ;;  %v3358_v45 = vld [vmem:[#allocation2 + $0x80] ss:$8 sps:$4 sm:$0xff]  }
  0x7c   :  { %2274 = vmatprep.subr.bf16.mxu0 %v3276_v8  ;;  %2590 = vmatprep.subr.bf16.mxu1 %v2919_v23  ;;  %v3344_v42 = vld [vmem:[#allocation2 + $0x74] ss:$8 sps:$4 sm:$0xff]   ;;  %v3350_v43 = vld [vmem:[#allocation2 + $0x70] ss:$8 sps:$4 sm:$0xff]   ;;  %v3368_v48 = vld [vmem:[#allocation2 + $0xa4] ss:$8 sps:$4 sm:$0xff]  }
  0x7d   :  { %v3360_v46 = vld [vmem:[#allocation2 + $0x94] ss:$8 sps:$4 sm:$0xff]   ;;  %v3366_v47 = vld [vmem:[#allocation2 + $0x90] ss:$8 sps:$4 sm:$0xff]   ;;  %v3374_v49 = vld [vmem:[#allocation2 + $0xa0] ss:$8 sps:$4 sm:$0xff]  }
  0x7e   :  { %v3376_v50 = vld [vmem:[#allocation2 + $0xb4] ss:$8 sps:$4 sm:$0xff]   ;;  %v2929_v51 = vld [vmem:[#allocation7 + $0x20] sm:$0xff]   ;;  %v3382_v52 = vld [vmem:[#allocation2 + $0xb0] ss:$8 sps:$4 sm:$0xff]  }
  0x7f   :  { %2275 = vmatpush3.bf16.msra.mxu0 %v3279_v9  ;;  %2591 = vmatpush3.bf16.msra.mxu1 %v2919_v23  ;;  %v3384_v53 = vld [vmem:[#allocation2 + $0xc4] ss:$8 sps:$4 sm:$0xff]   ;;  %v2931_v55 = vld [vmem:[#allocation7 + $0x30] sm:$0xff]   ;;  %v3390_v56 = vld [vmem:[#allocation2 + $0xc0] ss:$8 sps:$4 sm:$0xff]  }
  0x80   :  { %2276 = vmatprep.subr.bf16.mxu0 %v3282_v10  ;;  %2592 = vmatprep.subr.bf16.mxu1 %v2920_v25  ;;  %v2930_v54 = vld [vmem:[#allocation7 + $0x28] sm:$0xff]   ;;  %v3392_v57 = vld [vmem:[#allocation2 + $0xd4] ss:$8 sps:$4 sm:$0xff]   ;;  %v3397_v59 = vld [vmem:[#allocation2 + $0xd0] ss:$8 sps:$4 sm:$0xff]  }
  0x81   :  { %v2932_v58 = vld [vmem:[#allocation7 + $0x38] sm:$0xff]   ;;  %v3399_v60 = vld [vmem:[#allocation2 + $0xe4] ss:$8 sps:$4 sm:$0xff]   ;;  %v3403_v61 = vld [vmem:[#allocation2 + $0xe0] ss:$8 sps:$4 sm:$0xff]  }
  0x82   :  { %v3405_v62 = vld [vmem:[#allocation2 + $0xf4] ss:$8 sps:$4 sm:$0xff]   ;;  %v3409_v63 = vld [vmem:[#allocation2 + $0xf0] ss:$8 sps:$4 sm:$0xff]   ;;  %v2933_v1 = vld [vmem:[#allocation11] sm:$0xff]  }
  0x83   :  { %2277 = vmatpush3.bf16.msra.mxu0 %v3287_v12  ;;  %2593 = vmatpush3.bf16.msra.mxu1 %v2920_v25  ;;  %v2935_v25 = vld [vmem:[#allocation11 + $0x10] sm:$0xff]  }
  0x84   :  { %2278 = vmatprep.subr.bf16.mxu0 %v3291_v13  ;;  %2594 = vmatprep.subr.bf16.mxu1 %v2921_v27 }
  0x87   :  { %2279 = vmatpush3.bf16.msra.mxu0 %v3294_v14  ;;  %2595 = vmatpush3.bf16.msra.mxu1 %v2921_v27 }
  0x88   :  { %2280 = vmatprep.subr.bf16.mxu0 %v3297_v15  ;;  %2596 = vmatprep.subr.bf16.mxu1 %v2922_v29 }
  0x8b   :  { %2281 = vmatpush3.bf16.msra.mxu0 %v3300_v16  ;;  %2597 = vmatpush3.bf16.msra.mxu1 %v2922_v29 }
  0x8c   :  { %2598 = vmatprep.subr.bf16.mxu1 %v2923_v31 }
  0x8e   :  { %466 = vmatmul.mubr.bf16.vlgmr.msra.gmra.mrb[0].mxu0 %v3303_v17 }
  0x8f   :  { %473 = vmatprep.mubr.bf16.mxu0 %v3306_v18  ;;  %2599 = vmatpush3.bf16.msra.mxu1 %v2923_v31 }
  0x90   :  { %2600 = vmatprep.subr.bf16.mxu1 %v2924_v33 }
  0x93   :  { %2601 = vmatpush3.bf16.msra.mxu1 %v2924_v33  ;;  %v2936_v33 = vld [vmem:[#allocation11 + $0x18] sm:$0xff]  }
  0x94   :  { %2634 = vmatprep.subr.bf16.mxu1 %v2925_v35 }
  0x96   :  { %474 = vmatmul.mubr.bf16.gmra.mrb[4].mxu0 %v3310_v19  ;;  %2603 = vmatmul.mubr.bf16.vlgmr.msra.gmra.mrb[0].mxu1 %v3261_v3 }
  0x97   :  { %481 = vmatprep.mubr.bf16.mxu0 %v3312_v20  ;;  %2606 = vmatprep.mubr.bf16.mxu1 %v3267_v5 }
  0x98   :  { %2635 = vmatpush3.bf16.msra.mxu1 %v2925_v35 }
  0x99   :  { %2636 = vmatprep.subr.bf16.mxu1 %v2926_v37 }
  0x9c   :  { %2637 = vmatpush3.bf16.msra.mxu1 %v2926_v37 }
  0x9d   :  { %2638 = vmatprep.subr.bf16.mxu1 %v2927_v39 }
  0x9e   :  { %482 = vmatmul.mubr.bf16.gmra.mrb[8].mxu0 %v3316_v24  ;;  %2607 = vmatmul.mubr.bf16.gmra.mrb[4].mxu1 %v3273_v7 }
  0x9f   :  { %489 = vmatprep.mubr.bf16.mxu0 %v3318_v26  ;;  %2610 = vmatprep.mubr.bf16.mxu1 %v3279_v9 }
  0xa0   :  { %2639 = vmatpush3.bf16.msra.mxu1 %v2927_v39 }
  0xa1   :  { %2640 = vmatprep.subr.bf16.mxu1 %v2928_v41 }
  0xa4   :  { %2641 = vmatpush3.bf16.msra.mxu1 %v2928_v41 }
  0xa5   :  { %2642 = vmatprep.subr.bf16.mxu1 %v2929_v51 }
  0xa6   :  { %490 = vmatmul.mubr.bf16.gmra.mrb[12].mxu0 %v3322_v28  ;;  %2611 = vmatmul.mubr.bf16.gmra.mrb[8].mxu1 %v3287_v12 }
  0xa7   :  { %497 = vmatprep.mubr.bf16.mxu0 %v3324_v30  ;;  %2614 = vmatprep.mubr.bf16.mxu1 %v3294_v14 }
  0xa8   :  { %2643 = vmatpush3.bf16.msra.mxu1 %v2929_v51  ;;  %v2937_v51 = vld [vmem:[#allocation11 + $0x20] sm:$0xff]  }
  0xa9   :  { %2644 = vmatprep.subr.bf16.mxu1 %v2930_v54 }
  0xac   :  { %2645 = vmatpush3.bf16.msra.mxu1 %v2930_v54 }
  0xad   :  { %2646 = vmatprep.subr.bf16.mxu1 %v2931_v55 }
  0xae   :  { %498 = vmatmul.mubr.bf16.gmra.mrb[16].mxu0 %v3328_v32  ;;  %2615 = vmatmul.mubr.bf16.gmra.mrb[12].mxu1 %v3300_v16  ;;  %v2934_v16 = vld [vmem:[#allocation11 + $0x8] sm:$0xff]  }
  0xaf   :  { %505 = vmatprep.mubr.bf16.mxu0 %v3330_v34  ;;  %2618 = vmatprep.mubr.bf16.mxu1 %v3256_v0 }
  0xb0   :  { %2647 = vmatpush3.bf16.msra.mxu1 %v2931_v55 }
  0xb1   :  { %2648 = vmatprep.subr.bf16.mxu1 %v2932_v58 }
  0xb4   :  { %2649 = vmatpush3.bf16.msra.mxu1 %v2932_v58 }
  0xb5   :  { %2682 = vmatprep.subr.bf16.mxu1 %v2933_v1 }
  0xb6   :  { %506 = vmatmul.mubr.bf16.gmra.mrb[20].mxu0 %v3334_v36  ;;  %2619 = vmatmul.mubr.bf16.gmra.mrb[16].mxu1 %v3259_v2 }
  0xb7   :  { %513 = vmatprep.mubr.bf16.mxu0 %v3336_v38  ;;  %2622 = vmatprep.mubr.bf16.mxu1 %v3264_v4 }
  0xbe   :  { %514 = vmatmul.mubr.bf16.gmra.mrb[24].mxu0 %v3342_v40  ;;  %2623 = vmatmul.mubr.bf16.gmra.mrb[20].mxu1 %v3270_v6 }
  0xbf   :  { %521 = vmatprep.mubr.bf16.mxu0 %v3344_v42  ;;  %2626 = vmatprep.mubr.bf16.mxu1 %v3276_v8 }
  0xc6   :  { %522 = vmatmul.mubr.bf16.gmra.mrb[28].mxu0 %v3350_v43  ;;  %2627 = vmatmul.mubr.bf16.gmra.mrb[24].mxu1 %v3282_v10 }
  0xc7   :  { %529 = vmatprep.mubr.bf16.mxu0 %v3352_v44  ;;  %2630 = vmatprep.mubr.bf16.mxu1 %v3291_v13 }
  0xce   :  { %530 = vmatmul.mubr.bf16.gmra.mrb[32].mxu0 %v3358_v45  ;;  %2631 = vmatmul.mubr.bf16.gmra.mrb[28].mxu1 %v3297_v15 }
  0xcf   :  { %537 = vmatprep.mubr.bf16.mxu0 %v3360_v46 }
  0xd6   :  { %538 = vmatmul.mubr.bf16.gmra.mrb[36].mxu0 %v3366_v47 }
  0xd7   :  { %545 = vmatprep.mubr.bf16.mxu0 %v3368_v48 }
  0xde   :  { %546 = vmatmul.mubr.bf16.gmra.mrb[40].mxu0 %v3374_v49 }
  0xdf   :  { %553 = vmatprep.mubr.bf16.mxu0 %v3376_v50 }
  0xe6   :  { %554 = vmatmul.mubr.bf16.gmra.mrb[44].mxu0 %v3382_v52 }
  0xe7   :  { %561 = vmatprep.mubr.bf16.mxu0 %v3384_v53 }
  0xee   :  { %562 = vmatmul.mubr.bf16.gmra.mrb[48].mxu0 %v3390_v56 }
  0xef   :  { %569 = vmatprep.mubr.bf16.mxu0 %v3392_v57 }
  0xf6   :  { %570 = vmatmul.mubr.bf16.gmra.mrb[52].mxu0 %v3397_v59 }
  0xf7   :  { %577 = vmatprep.mubr.bf16.mxu0 %v3399_v60 }
  0xfe   :  { %578 = vmatmul.mubr.bf16.gmra.mrb[56].mxu0 %v3403_v61 }
  0xff   :  { %585 = vmatprep.mubr.bf16.mxu0 %v3405_v62 }
 0x106   :  { %586 = vmatmul.mubr.bf16.gmra.mrb[60].mxu0 %v3409_v63 }
 0x107   :  { %1179 = vmatprep.mubr.bf16.mxu0 %v3284_v11 }
 0x161   :  { %v2282_v0 = vpop.f32.mrb[0].mxu0 }
 0x162   :  { %v2283_v2 = vpop.f32.mrb[1].mxu0 }
 0x163   :  { %v2284_v3 = vadd.f32 %v2283_v2, %v2282_v0  ;;  %v2285_v4 = vpop.f32.mrb[2].mxu0  ;;  %v2938_v0 = vld [vmem:[#allocation11 + $0x28] sm:$0xff]  }
 0x164   :  { %v2286_v5 = vpop.f32.mrb[3].mxu0 }
 0x165   :  { %v2287_v6 = vadd.f32 %v2286_v5, %v2285_v4 }
 0x167   :  { %v594_v7 = vpack.c.bf16 %v2287_v6, %v2284_v3 }
 0x169   :  { %v2288_v8 = vpop.f32.mrb[4].mxu0  ;;  %2650 = vmatprep.mubr.bf16.mxu1 %v594_v7 }
 0x16a   :  { %v2289_v9 = vpop.f32.mrb[5].mxu0 }
 0x16b   :  { %v2290_v10 = vadd.f32 %v2289_v9, %v2288_v8  ;;  %v2291_v12 = vpop.f32.mrb[6].mxu0 }
 0x16c   :  { %v2292_v13 = vpop.f32.mrb[7].mxu0 }
 0x16d   :  { %v2293_v14 = vadd.f32 %v2292_v13, %v2291_v12 }
 0x16f   :  { %v595_v15 = vpack.c.bf16 %v2293_v14, %v2290_v10 }
 0x171   :  { %v2294_v21 = vpop.f32.mrb[8].mxu0  ;;  %2651 = vmatmul.mubr.bf16.vlgmr.msra.gmra.mrb[0].mxu1 %v595_v15 }
 0x172   :  { %v2295_v11 = vpop.f32.mrb[9].mxu0  ;;  %2683 = vmatpush3.bf16.msra.mxu1 %v2933_v1 }
 0x173   :  { %v2296_v22 = vadd.f32 %v2295_v11, %v2294_v21  ;;  %v2297_v23 = vpop.f32.mrb[10].mxu0  ;;  %2684 = vmatprep.subr.bf16.mxu1 %v2934_v16 }
 0x174   :  { %v2298_v27 = vpop.f32.mrb[11].mxu0 }
 0x175   :  { %v2299_v29 = vadd.f32 %v2298_v27, %v2297_v23 }
 0x176   :  { %2685 = vmatpush3.bf16.msra.mxu1 %v2934_v16 }
 0x177   :  { %v596_v31 = vpack.c.bf16 %v2299_v29, %v2296_v22  ;;  %2686 = vmatprep.subr.bf16.mxu1 %v2935_v25 }
 0x179   :  { %v2300_v35 = vpop.f32.mrb[12].mxu0  ;;  %2654 = vmatprep.mubr.bf16.mxu1 %v596_v31 }
 0x17a   :  { %v2301_v37 = vpop.f32.mrb[13].mxu0  ;;  %2687 = vmatpush3.bf16.msra.mxu1 %v2935_v25 }
 0x17b   :  { %v2302_v39 = vadd.f32 %v2301_v37, %v2300_v35  ;;  %v2303_v41 = vpop.f32.mrb[14].mxu0  ;;  %2688 = vmatprep.subr.bf16.mxu1 %v2936_v33 }
 0x17c   :  { %v2304_v54 = vpop.f32.mrb[15].mxu0 }
 0x17d   :  { %v2305_v55 = vadd.f32 %v2304_v54, %v2303_v41 }
 0x17e   :  { %2689 = vmatpush3.bf16.msra.mxu1 %v2936_v33 }
 0x17f   :  { %v597_v58 = vpack.c.bf16 %v2305_v55, %v2302_v39  ;;  %2690 = vmatprep.subr.bf16.mxu1 %v2937_v51 }
 0x181   :  { %v2306_v1 = vpop.f32.mrb[16].mxu0  ;;  %2655 = vmatmul.mubr.bf16.gmra.mrb[4].mxu1 %v597_v58 }
 0x182   :  { %v2307_v2 = vpop.f32.mrb[17].mxu0  ;;  %2691 = vmatpush3.bf16.msra.mxu1 %v2937_v51 }
 0x183   :  { %v2308_v3 = vadd.f32 %v2307_v2, %v2306_v1  ;;  %v2309_v4 = vpop.f32.mrb[18].mxu0  ;;  %2692 = vmatprep.subr.bf16.mxu1 %v2938_v0 }
 0x184   :  { %v2310_v5 = vpop.f32.mrb[19].mxu0 }
 0x185   :  { %v2311_v6 = vadd.f32 %v2310_v5, %v2309_v4 }
 0x186   :  { %2693 = vmatpush3.bf16.msra.mxu1 %v2938_v0 }
 0x187   :  { %v598_v7 = vpack.c.bf16 %v2311_v6, %v2308_v3 }
 0x189   :  { %v2312_v8 = vpop.f32.mrb[20].mxu0  ;;  %2658 = vmatprep.mubr.bf16.mxu1 %v598_v7 }
 0x18a   :  { %v2313_v9 = vpop.f32.mrb[21].mxu0 }
 0x18b   :  { %v2314_v10 = vadd.f32 %v2313_v9, %v2312_v8  ;;  %v2315_v12 = vpop.f32.mrb[22].mxu0 }
 0x18c   :  { %v2316_v13 = vpop.f32.mrb[23].mxu0 }
 0x18d   :  { %v2317_v14 = vadd.f32 %v2316_v13, %v2315_v12 }
 0x18f   :  { %v599_v15 = vpack.c.bf16 %v2317_v14, %v2314_v10 }
 0x191   :  { %v2318_v16 = vpop.f32.mrb[24].mxu0  ;;  %2659 = vmatmul.mubr.bf16.gmra.mrb[8].mxu1 %v599_v15 }
 0x192   :  { %v2319_v21 = vpop.f32.mrb[25].mxu0 }
 0x193   :  { %v2320_v11 = vadd.f32 %v2319_v21, %v2318_v16  ;;  %v2321_v22 = vpop.f32.mrb[26].mxu0 }
 0x194   :  { %v2322_v23 = vpop.f32.mrb[27].mxu0 }
 0x195   :  { %v2323_v25 = vadd.f32 %v2322_v23, %v2321_v22 }
 0x197   :  { %v600_v27 = vpack.c.bf16 %v2323_v25, %v2320_v11 }
 0x199   :  { %v2324_v29 = vpop.f32.mrb[28].mxu0  ;;  %2662 = vmatprep.mubr.bf16.mxu1 %v600_v27 }
 0x19a   :  { %v2325_v31 = vpop.f32.mrb[29].mxu0 }
 0x19b   :  { %v2326_v33 = vadd.f32 %v2325_v31, %v2324_v29  ;;  %v2327_v35 = vpop.f32.mrb[30].mxu0 }
 0x19c   :  { %v2328_v37 = vpop.f32.mrb[31].mxu0 }
 0x19d   :  { %v2329_v39 = vadd.f32 %v2328_v37, %v2327_v35 }
 0x19f   :  { %v601_v41 = vpack.c.bf16 %v2329_v39, %v2326_v33 }
 0x1a1   :  { %v2330_v51 = vpop.f32.mrb[32].mxu0  ;;  %2663 = vmatmul.mubr.bf16.gmra.mrb[12].mxu1 %v601_v41 }
 0x1a2   :  { %v2331_v54 = vpop.f32.mrb[33].mxu0 }
 0x1a3   :  { %v2332_v55 = vadd.f32 %v2331_v54, %v2330_v51  ;;  %v2333_v58 = vpop.f32.mrb[34].mxu0  ;;  %v2939_v54 = vld [vmem:[#allocation11 + $0x30] sm:$0xff]  }
 0x1a4   :  { %v2334_v0 = vpop.f32.mrb[35].mxu0  ;;  %2694 = vmatprep.subr.bf16.mxu1 %v2939_v54 }
 0x1a5   :  { %v2335_v1 = vadd.f32 %v2334_v0, %v2333_v58  ;;  %2695 = vmatpush3.bf16.msra.mxu1 %v2939_v54  ;;  %v2940_v0 = vld [vmem:[#allocation11 + $0x38] sm:$0xff]  }
 0x1a6   :  { %2696 = vmatprep.subr.bf16.mxu1 %v2940_v0 }
 0x1a7   :  { %v602_v2 = vpack.c.bf16 %v2335_v1, %v2332_v55 }
 0x1a9   :  { %v2336_v3 = vpop.f32.mrb[36].mxu0  ;;  %2666 = vmatprep.mubr.bf16.mxu1 %v602_v2  ;;  %2697 = vmatpush3.bf16.msra.mxu1 %v2940_v0 }
 0x1aa   :  { %v2337_v4 = vpop.f32.mrb[37].mxu0 }
 0x1ab   :  { %v2338_v5 = vadd.f32 %v2337_v4, %v2336_v3  ;;  %v2339_v6 = vpop.f32.mrb[38].mxu0 }
 0x1ac   :  { %v2340_v7 = vpop.f32.mrb[39].mxu0 }
 0x1ad   :  { %v2341_v8 = vadd.f32 %v2340_v7, %v2339_v6 }
 0x1af   :  { %v603_v9 = vpack.c.bf16 %v2341_v8, %v2338_v5 }
 0x1b1   :  { %2667 = vmatmul.mubr.bf16.gmra.mrb[16].mxu1 %v603_v9  ;;  %v2342_v10 = vpop.f32.mrb[40].mxu0 }
 0x1b2   :  { %v2343_v12 = vpop.f32.mrb[41].mxu0 }
 0x1b3   :  { %v2344_v13 = vadd.f32 %v2343_v12, %v2342_v10  ;;  %v2345_v14 = vpop.f32.mrb[42].mxu0 }
 0x1b4   :  { %v2346_v15 = vpop.f32.mrb[43].mxu0 }
 0x1b5   :  { %v2347_v16 = vadd.f32 %v2346_v15, %v2345_v14 }
 0x1b7   :  { %v604_v21 = vpack.c.bf16 %v2347_v16, %v2344_v13 }
 0x1b9   :  { %v2348_v11 = vpop.f32.mrb[44].mxu0  ;;  %2670 = vmatprep.mubr.bf16.mxu1 %v604_v21 }
 0x1ba   :  { %v2349_v22 = vpop.f32.mrb[45].mxu0 }
 0x1bb   :  { %v2350_v23 = vadd.f32 %v2349_v22, %v2348_v11  ;;  %v2351_v25 = vpop.f32.mrb[46].mxu0 }
 0x1bc   :  { %v2352_v27 = vpop.f32.mrb[47].mxu0 }
 0x1bd   :  { %v2353_v29 = vadd.f32 %v2352_v27, %v2351_v25  ;;  %v3416_v27 = vld [vmem:[%s3569_s4] ss:$0 sm:$0xff] }
 0x1bf   :  { %v605_v31 = vpack.c.bf16 %v2353_v29, %v2350_v23 }
 0x1c1   :  { %2671 = vmatmul.mubr.bf16.gmra.mrb[20].mxu1 %v605_v31  ;;  %v2354_v33 = vpop.f32.mrb[48].mxu0 }
 0x1c2   :  { %v2355_v35 = vpop.f32.mrb[49].mxu0 }
 0x1c3   :  { %v2356_v37 = vadd.f32 %v2355_v35, %v2354_v33  ;;  %v2357_v39 = vpop.f32.mrb[50].mxu0 }
 0x1c4   :  { %v2358_v41 = vpop.f32.mrb[51].mxu0 }
 0x1c5   :  { %v2359_v51 = vadd.f32 %v2358_v41, %v2357_v39 }
 0x1c7   :  { %v606_v55 = vpack.c.bf16 %v2359_v51, %v2356_v37 }
 0x1c9   :  { %v2360_v58 = vpop.f32.mrb[52].mxu0  ;;  %2674 = vmatprep.mubr.bf16.mxu1 %v606_v55 }
 0x1ca   :  { %v2361_v1 = vpop.f32.mrb[53].mxu0 }
 0x1cb   :  { %v2362_v2 = vadd.f32 %v2361_v1, %v2360_v58  ;;  %v2363_v3 = vpop.f32.mrb[54].mxu0 }
 0x1cc   :  { %v2364_v4 = vpop.f32.mrb[55].mxu0 }
 0x1cd   :  { %v2365_v5 = vadd.f32 %v2364_v4, %v2363_v3 }
 0x1cf   :  { %v607_v6 = vpack.c.bf16 %v2365_v5, %v2362_v2 }
 0x1d1   :  { %2675 = vmatmul.mubr.bf16.gmra.mrb[24].mxu1 %v607_v6  ;;  %v2366_v7 = vpop.f32.mrb[56].mxu0 }
 0x1d2   :  { %v2367_v8 = vpop.f32.mrb[57].mxu0 }
 0x1d3   :  { %v2368_v9 = vadd.f32 %v2367_v8, %v2366_v7  ;;  %v2369_v10 = vpop.f32.mrb[58].mxu0 }
 0x1d4   :  { %v2370_v12 = vpop.f32.mrb[59].mxu0 }
 0x1d5   :  { %v2371_v13 = vadd.f32 %v2370_v12, %v2369_v10 }
 0x1d7   :  { %v608_v14 = vpack.c.bf16 %v2371_v13, %v2368_v9 }
 0x1d9   :  { %v2372_v15 = vpop.f32.mrb[60].mxu0  ;;  %2678 = vmatprep.mubr.bf16.mxu1 %v608_v14 }
 0x1da   :  { %v2373_v16 = vpop.f32.mrb[61].mxu0 }
 0x1db   :  { %v2374_v21 = vadd.f32 %v2373_v16, %v2372_v15  ;;  %v2375_v11 = vpop.f32.mrb[62].mxu0 }
 0x1dc   :  { %v2376_v22 = vpop.f32.mrb[63].mxu0 }
 0x1dd   :  { %v2377_v23 = vadd.f32 %v2376_v22, %v2375_v11 }
 0x1df   :  { %v609_v25 = vpack.c.bf16 %v2377_v23, %v2374_v21 }
 0x1e1   :  { %2679 = vmatmul.mubr.bf16.gmra.mrb[28].mxu1 %v609_v25 }
 0x244   :  { %v2652_v29 = vpop.f32.mrb[0].mxu1 }
 0x245   :  { %v1069_v31 = vadd.f32 %v2652_v29, %v3416_v27  ;;  %v933_v33 = vpop.f32.mrb[1].mxu1 }
 0x246   :  { %v1067_v35 = vadd.f32 %v3416_v27, %v933_v33  ;;  %v2653_v37 = vpop.f32.mrb[2].mxu1 }
 0x247   :  { %v1070_v39 = vadd.f32 %v2653_v37, %v3416_v27  ;;  %v936_v41 = vpop.f32.mrb[3].mxu1  ;;  %v1101_v54 = vmax.f32 %v1069_v31, 0.0 }
 0x248   :  { %v1068_v51 = vadd.f32 %v3416_v27, %v936_v41  ;;  %v1099_v58 = vmax.f32 %v1067_v35, 0.0 }
 0x249   :  { %v1102_v55 = vmax.f32 %v1070_v39, 0.0 }
 0x24a   :  { %v1100_v0 = vmax.f32 %v1068_v51, 0.0 }
 0x24b   :  { %v3422_v1 = vpack.c.bf16 %v1102_v55, %v1101_v54 }
 0x24c   :  { %v3424_v2 = vpack.c.bf16 %v1100_v0, %v1099_v58 }
 0x24e   :  { %2698 = vmatprep.mubr.bf16.mxu1 %v3424_v2 }
 0x24f   :  { %2699 = vmatmul.mubr.bf16.vlgmr.msra.gmra.mrb[32].mxu1 %v3422_v1 }
 0x254   :  { %v2656_v3 = vpop.f32.mrb[4].mxu1 }
 0x255   :  { %v1073_v4 = vadd.f32 %v2656_v3, %v3416_v27  ;;  %v949_v5 = vpop.f32.mrb[5].mxu1 }
 0x256   :  { %v1071_v6 = vadd.f32 %v3416_v27, %v949_v5  ;;  %v2657_v7 = vpop.f32.mrb[6].mxu1 }
 0x257   :  { %v1074_v8 = vadd.f32 %v2657_v7, %v3416_v27  ;;  %v952_v9 = vpop.f32.mrb[7].mxu1  ;;  %v1105_v12 = vmax.f32 %v1073_v4, 0.0 }
 0x258   :  { %v1072_v10 = vadd.f32 %v3416_v27, %v952_v9  ;;  %v1103_v14 = vmax.f32 %v1071_v6, 0.0 }
 0x259   :  { %v1106_v13 = vmax.f32 %v1074_v8, 0.0 }
 0x25a   :  { %v1104_v15 = vmax.f32 %v1072_v10, 0.0 }
 0x25b   :  { %v3432_v16 = vpack.c.bf16 %v1106_v13, %v1105_v12 }
 0x25c   :  { %v3434_v21 = vpack.c.bf16 %v1104_v15, %v1103_v14 }
 0x25e   :  { %2702 = vmatprep.mubr.bf16.mxu1 %v3434_v21 }
 0x25f   :  { %2703 = vmatmul.mubr.bf16.gmra.mrb[36].mxu1 %v3432_v16 }
 0x264   :  { %v2660_v11 = vpop.f32.mrb[8].mxu1 }
 0x265   :  { %v1077_v22 = vadd.f32 %v2660_v11, %v3416_v27  ;;  %v965_v23 = vpop.f32.mrb[9].mxu1 }
 0x266   :  { %v1075_v25 = vadd.f32 %v3416_v27, %v965_v23  ;;  %v2661_v29 = vpop.f32.mrb[10].mxu1 }
 0x267   :  { %v1078_v31 = vadd.f32 %v2661_v29, %v3416_v27  ;;  %v968_v33 = vpop.f32.mrb[11].mxu1  ;;  %v1109_v37 = vmax.f32 %v1077_v22, 0.0 }
 0x268   :  { %v1076_v35 = vadd.f32 %v3416_v27, %v968_v33  ;;  %v1107_v41 = vmax.f32 %v1075_v25, 0.0 }
 0x269   :  { %v1110_v39 = vmax.f32 %v1078_v31, 0.0 }
 0x26a   :  { %v1108_v51 = vmax.f32 %v1076_v35, 0.0 }
 0x26b   :  { %v3442_v54 = vpack.c.bf16 %v1110_v39, %v1109_v37 }
 0x26c   :  { %v3444_v55 = vpack.c.bf16 %v1108_v51, %v1107_v41 }
 0x26e   :  { %2706 = vmatprep.mubr.bf16.mxu1 %v3444_v55 }
 0x26f   :  { %2707 = vmatmul.mubr.bf16.gmra.mrb[40].mxu1 %v3442_v54 }
 0x274   :  { %v2664_v58 = vpop.f32.mrb[12].mxu1 }
 0x275   :  { %v1081_v0 = vadd.f32 %v2664_v58, %v3416_v27  ;;  %v981_v3 = vpop.f32.mrb[13].mxu1 }
 0x276   :  { %v1079_v4 = vadd.f32 %v3416_v27, %v981_v3  ;;  %v2665_v5 = vpop.f32.mrb[14].mxu1 }
 0x277   :  { %v1082_v6 = vadd.f32 %v2665_v5, %v3416_v27  ;;  %v984_v7 = vpop.f32.mrb[15].mxu1  ;;  %v1113_v9 = vmax.f32 %v1081_v0, 0.0 }
 0x278   :  { %v1080_v8 = vadd.f32 %v3416_v27, %v984_v7  ;;  %v1111_v12 = vmax.f32 %v1079_v4, 0.0 }
 0x279   :  { %v1114_v10 = vmax.f32 %v1082_v6, 0.0 }
 0x27a   :  { %v1112_v13 = vmax.f32 %v1080_v8, 0.0 }
 0x27b   :  { %v3452_v14 = vpack.c.bf16 %v1114_v10, %v1113_v9 }
 0x27c   :  { %v3454_v15 = vpack.c.bf16 %v1112_v13, %v1111_v12 }
 0x27e   :  { %2710 = vmatprep.mubr.bf16.mxu1 %v3454_v15 }
 0x27f   :  { %2711 = vmatmul.mubr.bf16.gmra.mrb[44].mxu1 %v3452_v14 }
 0x284   :  { %v2668_v11 = vpop.f32.mrb[16].mxu1 }
 0x285   :  { %v1085_v22 = vadd.f32 %v2668_v11, %v3416_v27  ;;  %v997_v23 = vpop.f32.mrb[17].mxu1 }
 0x286   :  { %v1083_v25 = vadd.f32 %v3416_v27, %v997_v23  ;;  %v2669_v29 = vpop.f32.mrb[18].mxu1 }
 0x287   :  { %v1086_v31 = vadd.f32 %v2669_v29, %v3416_v27  ;;  %v1000_v33 = vpop.f32.mrb[19].mxu1  ;;  %v1117_v37 = vmax.f32 %v1085_v22, 0.0 }
 0x288   :  { %v1084_v35 = vadd.f32 %v3416_v27, %v1000_v33  ;;  %v1115_v41 = vmax.f32 %v1083_v25, 0.0 }
 0x289   :  { %v1118_v39 = vmax.f32 %v1086_v31, 0.0 }
 0x28a   :  { %v1116_v51 = vmax.f32 %v1084_v35, 0.0 }
 0x28b   :  { %v1140_v58 = vpack.c.bf16 %v1118_v39, %v1117_v37 }
 0x28c   :  { %v1139_v0 = vpack.c.bf16 %v1116_v51, %v1115_v41 }
 0x28e   :  { %2426 = vmatprep.subr.bf16.mxu0 %v1139_v0  ;;  %2714 = vmatprep.mubr.bf16.mxu1 %v1139_v0 }
 0x28f   :  { %2427 = vmatpush3.bf16.msra.mxu0 %v3424_v2  ;;  %2715 = vmatmul.mubr.bf16.gmra.mrb[48].mxu1 %v1140_v58 }
 0x290   :  { %2428 = vmatprep.subr.bf16.mxu0 %v1140_v58 }
 0x293   :  { %2429 = vmatpush3.bf16.msra.mxu0 %v3422_v1 }
 0x294   :  { %v2672_v3 = vpop.f32.mrb[20].mxu1 }
 0x295   :  { %v1089_v4 = vadd.f32 %v2672_v3, %v3416_v27  ;;  %v1013_v5 = vpop.f32.mrb[21].mxu1 }
 0x296   :  { %v1087_v6 = vadd.f32 %v3416_v27, %v1013_v5  ;;  %v2673_v7 = vpop.f32.mrb[22].mxu1 }
 0x297   :  { %v1090_v8 = vadd.f32 %v2673_v7, %v3416_v27  ;;  %v1016_v9 = vpop.f32.mrb[23].mxu1  ;;  %v1121_v12 = vmax.f32 %v1089_v4, 0.0 }
 0x298   :  { %v1088_v10 = vadd.f32 %v3416_v27, %v1016_v9  ;;  %v1119_v11 = vmax.f32 %v1087_v6, 0.0 }
 0x299   :  { %v1122_v13 = vmax.f32 %v1090_v8, 0.0 }
 0x29a   :  { %v1120_v2 = vmax.f32 %v1088_v10, 0.0 }
 0x29b   :  { %v1142_v22 = vpack.c.bf16 %v1122_v13, %v1121_v12 }
 0x29c   :  { %v1141_v23 = vpack.c.bf16 %v1120_v2, %v1119_v11 }
 0x29e   :  { %2430 = vmatprep.subr.bf16.mxu0 %v1141_v23  ;;  %2718 = vmatprep.mubr.bf16.mxu1 %v1141_v23  ;;  %v2942_v23 = vld [vmem:[#allocation10 + $0x8] sm:$0xff]  }
 0x29f   :  { %2431 = vmatpush3.bf16.msra.mxu0 %v3434_v21  ;;  %2719 = vmatmul.mubr.bf16.gmra.mrb[52].mxu1 %v1142_v22 }
 0x2a0   :  { %2432 = vmatprep.subr.bf16.mxu0 %v1142_v22 }
 0x2a3   :  { %2433 = vmatpush3.bf16.msra.mxu0 %v3432_v16 }
 0x2a4   :  { %v2676_v1 = vpop.f32.mrb[24].mxu1 }
 0x2a5   :  { %v1093_v25 = vadd.f32 %v2676_v1, %v3416_v27  ;;  %v1029_v29 = vpop.f32.mrb[25].mxu1  ;;  %v2943_v1 = vld [vmem:[#allocation10 + $0x10] sm:$0xff]  }
 0x2a6   :  { %v1091_v31 = vadd.f32 %v3416_v27, %v1029_v29  ;;  %v2677_v33 = vpop.f32.mrb[26].mxu1 }
 0x2a7   :  { %v1094_v35 = vadd.f32 %v2677_v33, %v3416_v27  ;;  %v1032_v37 = vpop.f32.mrb[27].mxu1  ;;  %v1125_v41 = vmax.f32 %v1093_v25, 0.0  ;;  %v2945_v25 = vld [vmem:[#allocation10 + $0x20] sm:$0xff]  }
 0x2a8   :  { %v1092_v39 = vadd.f32 %v3416_v27, %v1032_v37  ;;  %v1123_v58 = vmax.f32 %v1091_v31, 0.0 }
 0x2a9   :  { %v1126_v51 = vmax.f32 %v1094_v35, 0.0 }
 0x2aa   :  { %v1124_v21 = vmax.f32 %v1092_v39, 0.0 }
 0x2ab   :  { %v1144_v0 = vpack.c.bf16 %v1126_v51, %v1125_v41 }
 0x2ac   :  { %v1143_v3 = vpack.c.bf16 %v1124_v21, %v1123_v58 }
 0x2ae   :  { %2434 = vmatprep.subr.bf16.mxu0 %v1143_v3  ;;  %2722 = vmatprep.mubr.bf16.mxu1 %v1143_v3 }
 0x2af   :  { %2435 = vmatpush3.bf16.msra.mxu0 %v3444_v55  ;;  %2723 = vmatmul.mubr.bf16.gmra.mrb[56].mxu1 %v1144_v0 }
 0x2b0   :  { %2436 = vmatprep.subr.bf16.mxu0 %v1144_v0 }
 0x2b3   :  { %2437 = vmatpush3.bf16.msra.mxu0 %v3442_v54  ;;  %v2941_v54 = vld [vmem:[#allocation10] sm:$0xff]  }
 0x2b4   :  { %v2680_v16 = vpop.f32.mrb[28].mxu1  ;;  %2730 = vmatprep.subr.bf16.mxu1 %v2941_v54 }
 0x2b5   :  { %v1097_v4 = vadd.f32 %v2680_v16, %v3416_v27  ;;  %v1045_v5 = vpop.f32.mrb[29].mxu1  ;;  %2731 = vmatpush3.bf16.msra.mxu1 %v2941_v54 }
 0x2b6   :  { %v1095_v6 = vadd.f32 %v3416_v27, %v1045_v5  ;;  %v2681_v7 = vpop.f32.mrb[30].mxu1  ;;  %2732 = vmatprep.subr.bf16.mxu1 %v2942_v23 }
 0x2b7   :  { %v1098_v8 = vadd.f32 %v2681_v7, %v3416_v27  ;;  %v1048_v9 = vpop.f32.mrb[31].mxu1  ;;  %v1129_v12 = vmax.f32 %v1097_v4, 0.0 }
 0x2b8   :  { %v1096_v10 = vadd.f32 %v3416_v27, %v1048_v9  ;;  %v1127_v11 = vmax.f32 %v1095_v6, 0.0  ;;  %v2944_v27 = vld [vmem:[#allocation10 + $0x18] sm:$0xff]  }
 0x2b9   :  { %v1130_v13 = vmax.f32 %v1098_v8, 0.0  ;;  %2733 = vmatpush3.bf16.msra.mxu1 %v2942_v23 }
 0x2ba   :  { %v1128_v55 = vmax.f32 %v1096_v10, 0.0  ;;  %2734 = vmatprep.subr.bf16.mxu1 %v2943_v1 }
 0x2bb   :  { %v1146_v2 = vpack.c.bf16 %v1130_v13, %v1129_v12 }
 0x2bc   :  { %v1145_v22 = vpack.c.bf16 %v1128_v55, %v1127_v11 }
 0x2bd   :  { %2735 = vmatpush3.bf16.msra.mxu1 %v2943_v1 }
 0x2be   :  { %2438 = vmatprep.subr.bf16.mxu0 %v1145_v22  ;;  %2726 = vmatprep.mubr.bf16.mxu1 %v1145_v22 }
 0x2bf   :  { %2439 = vmatpush3.bf16.msra.mxu0 %v3454_v15  ;;  %2727 = vmatmul.mubr.bf16.gmra.mrb[60].mxu1 %v1146_v2 }
 0x2c0   :  { %2440 = vmatprep.subr.bf16.mxu0 %v1146_v2  ;;  %2736 = vmatprep.subr.bf16.mxu1 %v2944_v27 }
 0x2c1   :  { %2737 = vmatpush3.bf16.msra.mxu1 %v2944_v27 }
 0x2c2   :  { %2738 = vmatprep.subr.bf16.mxu1 %v2945_v25 }
 0x2c3   :  { %2441 = vmatpush3.bf16.msra.mxu0 %v3452_v14 }
 0x2c5   :  { %2739 = vmatpush3.bf16.msra.mxu1 %v2945_v25 }
 0x2c6   :  { %1180 = vmatmul.mubr.bf16.vlgmr.msra.gmra.mrb[64].mxu0 %v3303_v17  ;;  %v2946_v17 = vld [vmem:[#allocation10 + $0x28] sm:$0xff]  }
 0x2c7   :  { %1187 = vmatprep.mubr.bf16.mxu0 %v3306_v18  ;;  %2740 = vmatprep.subr.bf16.mxu1 %v2946_v17  ;;  %v2947_v18 = vld [vmem:[#allocation10 + $0x30] sm:$0xff]  }
 0x2c9   :  { %2741 = vmatpush3.bf16.msra.mxu1 %v2946_v17 }
 0x2ca   :  { %2742 = vmatprep.subr.bf16.mxu1 %v2947_v18 }
 0x2cd   :  { %2743 = vmatpush3.bf16.msra.mxu1 %v2947_v18 }
 0x2ce   :  { %1188 = vmatmul.mubr.bf16.gmra.mrb[68].mxu0 %v3310_v19  ;;  %v2948_v19 = vld [vmem:[#allocation10 + $0x38] sm:$0xff]  }
 0x2cf   :  { %1195 = vmatprep.mubr.bf16.mxu0 %v3312_v20  ;;  %2744 = vmatprep.subr.bf16.mxu1 %v2948_v19 }
 0x2d1   :  { %2745 = vmatpush3.bf16.msra.mxu1 %v2948_v19 }
 0x2d6   :  { %1196 = vmatmul.mubr.bf16.gmra.mrb[72].mxu0 %v3316_v24 }
 0x2d7   :  { %1203 = vmatprep.mubr.bf16.mxu0 %v3318_v26 }
 0x2de   :  { %1204 = vmatmul.mubr.bf16.gmra.mrb[76].mxu0 %v3322_v28 }
 0x2df   :  { %1211 = vmatprep.mubr.bf16.mxu0 %v3324_v30 }
 0x2e6   :  { %1212 = vmatmul.mubr.bf16.gmra.mrb[80].mxu0 %v3328_v32 }
 0x2e7   :  { %1219 = vmatprep.mubr.bf16.mxu0 %v3330_v34 }
 0x2ee   :  { %1220 = vmatmul.mubr.bf16.gmra.mrb[84].mxu0 %v3334_v36 }
 0x2ef   :  { %1227 = vmatprep.mubr.bf16.mxu0 %v3336_v38 }
 0x2f6   :  { %1228 = vmatmul.mubr.bf16.gmra.mrb[88].mxu0 %v3342_v40 }
 0x2f7   :  { %1235 = vmatprep.mubr.bf16.mxu0 %v3344_v42 }
 0x2fe   :  { %1236 = vmatmul.mubr.bf16.gmra.mrb[92].mxu0 %v3350_v43 }
 0x2ff   :  { %1243 = vmatprep.mubr.bf16.mxu0 %v3352_v44 }
 0x306   :  { %1244 = vmatmul.mubr.bf16.gmra.mrb[96].mxu0 %v3358_v45 }
 0x307   :  { %1251 = vmatprep.mubr.bf16.mxu0 %v3360_v46 }
 0x30e   :  { %1252 = vmatmul.mubr.bf16.gmra.mrb[100].mxu0 %v3366_v47 }
 0x30f   :  { %1259 = vmatprep.mubr.bf16.mxu0 %v3368_v48 }
 0x316   :  { %1260 = vmatmul.mubr.bf16.gmra.mrb[104].mxu0 %v3374_v49 }
 0x317   :  { %1267 = vmatprep.mubr.bf16.mxu0 %v3376_v50 }
 0x31e   :  { %1268 = vmatmul.mubr.bf16.gmra.mrb[108].mxu0 %v3382_v52 }
 0x31f   :  { %1275 = vmatprep.mubr.bf16.mxu0 %v3384_v53 }
 0x326   :  { %1276 = vmatmul.mubr.bf16.gmra.mrb[112].mxu0 %v3390_v56 }
 0x327   :  { %1283 = vmatprep.mubr.bf16.mxu0 %v3392_v57 }
 0x32e   :  { %1284 = vmatmul.mubr.bf16.gmra.mrb[116].mxu0 %v3397_v59 }
 0x32f   :  { %1291 = vmatprep.mubr.bf16.mxu0 %v3399_v60 }
 0x336   :  { %1292 = vmatmul.mubr.bf16.gmra.mrb[120].mxu0 %v3403_v61 }
 0x337   :  { %1299 = vmatprep.mubr.bf16.mxu0 %v3405_v62 }
 0x33e   :  { %1300 = vmatmul.mubr.bf16.gmra.mrb[124].mxu0 %v3409_v63 }
 0x399   :  { %v2442_v20 = vpop.f32.mrb[64].mxu0 }
 0x39a   :  { %v2443_v24 = vpop.f32.mrb[65].mxu0 }
 0x39b   :  { %v2444_v26 = vadd.f32 %v2443_v24, %v2442_v20  ;;  %v2445_v28 = vpop.f32.mrb[66].mxu0 }
 0x39c   :  { %v2446_v30 = vpop.f32.mrb[67].mxu0 }
 0x39d   :  { %v2447_v32 = vadd.f32 %v2446_v30, %v2445_v28 }
 0x39f   :  { %v1308_v34 = vpack.c.bf16 %v2447_v32, %v2444_v26 }
 0x3a1   :  { %v2448_v36 = vpop.f32.mrb[68].mxu0  ;;  %2746 = vmatprep.mubr.bf16.mxu1 %v1308_v34 }
 0x3a2   :  { %v2449_v38 = vpop.f32.mrb[69].mxu0 }
 0x3a3   :  { %v2450_v40 = vadd.f32 %v2449_v38, %v2448_v36  ;;  %v2451_v42 = vpop.f32.mrb[70].mxu0 }
 0x3a4   :  { %v2452_v43 = vpop.f32.mrb[71].mxu0 }
 0x3a5   :  { %v2453_v44 = vadd.f32 %v2452_v43, %v2451_v42 }
 0x3a7   :  { %v1309_v45 = vpack.c.bf16 %v2453_v44, %v2450_v40 }
 0x3a9   :  { %2747 = vmatmul.mubr.bf16.vlgmr.msra.gmra.mrb[32].mxu1 %v1309_v45  ;;  %v2454_v46 = vpop.f32.mrb[72].mxu0 }
 0x3aa   :  { %v2455_v47 = vpop.f32.mrb[73].mxu0 }
 0x3ab   :  { %v2456_v48 = vadd.f32 %v2455_v47, %v2454_v46  ;;  %v2457_v49 = vpop.f32.mrb[74].mxu0 }
 0x3ac   :  { %v2458_v50 = vpop.f32.mrb[75].mxu0 }
 0x3ad   :  { %v2459_v52 = vadd.f32 %v2458_v50, %v2457_v49 }
 0x3af   :  { %v1310_v53 = vpack.c.bf16 %v2459_v52, %v2456_v48 }
 0x3b1   :  { %v2460_v56 = vpop.f32.mrb[76].mxu0  ;;  %2750 = vmatprep.mubr.bf16.mxu1 %v1310_v53 }
 0x3b2   :  { %v2461_v57 = vpop.f32.mrb[77].mxu0 }
 0x3b3   :  { %v2462_v59 = vadd.f32 %v2461_v57, %v2460_v56  ;;  %v2463_v60 = vpop.f32.mrb[78].mxu0 }
 0x3b4   :  { %v2464_v61 = vpop.f32.mrb[79].mxu0 }
 0x3b5   :  { %v2465_v62 = vadd.f32 %v2464_v61, %v2463_v60 }
 0x3b7   :  { %v1311_v63 = vpack.c.bf16 %v2465_v62, %v2462_v59 }
 0x3b9   :  { %2751 = vmatmul.mubr.bf16.gmra.mrb[36].mxu1 %v1311_v63  ;;  %v2466_v14 = vpop.f32.mrb[80].mxu0 }
 0x3ba   :  { %v2467_v15 = vpop.f32.mrb[81].mxu0 }
 0x3bb   :  { %v2468_v29 = vadd.f32 %v2467_v15, %v2466_v14  ;;  %v2469_v31 = vpop.f32.mrb[82].mxu0 }
 0x3bc   :  { %v2470_v33 = vpop.f32.mrb[83].mxu0 }
 0x3bd   :  { %v2471_v35 = vadd.f32 %v2470_v33, %v2469_v31 }
 0x3bf   :  { %v1312_v37 = vpack.c.bf16 %v2471_v35, %v2468_v29 }
 0x3c1   :  { %v2472_v39 = vpop.f32.mrb[84].mxu0  ;;  %2754 = vmatprep.mubr.bf16.mxu1 %v1312_v37 }
 0x3c2   :  { %v2473_v41 = vpop.f32.mrb[85].mxu0 }
 0x3c3   :  { %v2474_v51 = vadd.f32 %v2473_v41, %v2472_v39  ;;  %v2475_v58 = vpop.f32.mrb[86].mxu0 }
 0x3c4   :  { %v2476_v21 = vpop.f32.mrb[87].mxu0 }
 0x3c5   :  { %v2477_v0 = vadd.f32 %v2476_v21, %v2475_v58 }
 0x3c7   :  { %v1313_v3 = vpack.c.bf16 %v2477_v0, %v2474_v51 }
 0x3c9   :  { %2755 = vmatmul.mubr.bf16.gmra.mrb[40].mxu1 %v1313_v3  ;;  %v2478_v16 = vpop.f32.mrb[88].mxu0 }
 0x3ca   :  { %v2479_v4 = vpop.f32.mrb[89].mxu0 }
 0x3cb   :  { %v2480_v5 = vadd.f32 %v2479_v4, %v2478_v16  ;;  %v2481_v6 = vpop.f32.mrb[90].mxu0 }
 0x3cc   :  { %v2482_v7 = vpop.f32.mrb[91].mxu0 }
 0x3cd   :  { %v2483_v8 = vadd.f32 %v2482_v7, %v2481_v6 }
 0x3cf   :  { %v1314_v9 = vpack.c.bf16 %v2483_v8, %v2480_v5 }
 0x3d1   :  { %v2484_v10 = vpop.f32.mrb[92].mxu0  ;;  %2758 = vmatprep.mubr.bf16.mxu1 %v1314_v9  ;;  %v3516_v9 = vld [vmem:[%s3572_s7] ss:$0 sm:$0xff]  ;;  %s3123_s7 = smov [#allocation13]  }
 0x3d2   :  { %v2485_v12 = vpop.f32.mrb[93].mxu0  ;;  %s2010_s12 = sshll.u32 %s3123_s7, 4  ;;  %s2011_s12 = int_to_ptr.vmem [resolvable:$true] %s2010_s12 }
 0x3d3   :  { %v2486_v13 = vadd.f32 %v2485_v12, %v2484_v10  ;;  %v2487_v11 = vpop.f32.mrb[94].mxu0  ;;  %s3081_s13 = scalar_lea.vmem %s2011_s12, 2048  ;;  %p3086_p7 = scmp.lt.s32.totalorder %s2011_s12, %s2011_s12 }
 0x3d4   :  { %v2488_v55 = vpop.f32.mrb[95].mxu0  ;;  %p3082_p6 = scmp.ne.s32.totalorder %s2011_s12, %s3081_s13  ;;  %p3087_p8 = scmp.lt.s32.totalorder %s3081_s13, %s3081_s13 }
 0x3d5   :  { %v2489_v2 = vadd.f32 %v2488_v55, %v2487_v11 }
 0x3d6   :  { %p3088_p9 = por %p3087_p8, %p3086_p7 }
 0x3d7   :  { %v1315_v22 = vpack.c.bf16 %v2489_v2, %v2486_v13 }
 0x3d8   :  { %p3089_p10 = pnand %p3088_p9, %p3082_p6 }
 0x3d9   :  { %2759 = vmatmul.mubr.bf16.gmra.mrb[44].mxu1 %v1315_v22  ;;  %v2490_v54 = vpop.f32.mrb[96].mxu0 }
 0x3da   :  { %v2491_v23 = vpop.f32.mrb[97].mxu0 }
 0x3db   :  { %v2492_v1 = vadd.f32 %v2491_v23, %v2490_v54  ;;  %v2493_v27 = vpop.f32.mrb[98].mxu0 }
 0x3dc   :  { %v2494_v25 = vpop.f32.mrb[99].mxu0 }
 0x3dd   :  { %v2495_v17 = vadd.f32 %v2494_v25, %v2493_v27 }
 0x3df   :  { %v1316_v18 = vpack.c.bf16 %v2495_v17, %v2492_v1 }
 0x3e1   :  { %v2496_v19 = vpop.f32.mrb[100].mxu0  ;;  %2762 = vmatprep.mubr.bf16.mxu1 %v1316_v18 }
 0x3e2   :  { %v2497_v20 = vpop.f32.mrb[101].mxu0 }
 0x3e3   :  { %v2498_v24 = vadd.f32 %v2497_v20, %v2496_v19  ;;  %v2499_v26 = vpop.f32.mrb[102].mxu0 }
 0x3e4   :  { %v2500_v28 = vpop.f32.mrb[103].mxu0 }
 0x3e5   :  { %v2501_v30 = vadd.f32 %v2500_v28, %v2499_v26 }
 0x3e7   :  { %v1317_v32 = vpack.c.bf16 %v2501_v30, %v2498_v24 }
 0x3e9   :  { %2763 = vmatmul.mubr.bf16.gmra.mrb[48].mxu1 %v1317_v32  ;;  %v2502_v34 = vpop.f32.mrb[104].mxu0 }
 0x3ea   :  { %v2503_v36 = vpop.f32.mrb[105].mxu0 }
 0x3eb   :  { %v2504_v38 = vadd.f32 %v2503_v36, %v2502_v34  ;;  %v2505_v40 = vpop.f32.mrb[106].mxu0 }
 0x3ec   :  { %v2506_v42 = vpop.f32.mrb[107].mxu0 }
 0x3ed   :  { %v2507_v43 = vadd.f32 %v2506_v42, %v2505_v40 }
 0x3ef   :  { %v1318_v44 = vpack.c.bf16 %v2507_v43, %v2504_v38 }
 0x3f1   :  { %v2508_v45 = vpop.f32.mrb[108].mxu0  ;;  %2766 = vmatprep.mubr.bf16.mxu1 %v1318_v44 }
 0x3f2   :  { %v2509_v46 = vpop.f32.mrb[109].mxu0 }
 0x3f3   :  { %v2510_v47 = vadd.f32 %v2509_v46, %v2508_v45  ;;  %v2511_v48 = vpop.f32.mrb[110].mxu0 }
 0x3f4   :  { %v2512_v49 = vpop.f32.mrb[111].mxu0 }
 0x3f5   :  { %v2513_v50 = vadd.f32 %v2512_v49, %v2511_v48 }
 0x3f7   :  { %v1319_v52 = vpack.c.bf16 %v2513_v50, %v2510_v47 }
 0x3f9   :  { %2767 = vmatmul.mubr.bf16.gmra.mrb[52].mxu1 %v1319_v52  ;;  %v2514_v53 = vpop.f32.mrb[112].mxu0 }
 0x3fa   :  { %v2515_v56 = vpop.f32.mrb[113].mxu0 }
 0x3fb   :  { %v2516_v57 = vadd.f32 %v2515_v56, %v2514_v53  ;;  %v2517_v59 = vpop.f32.mrb[114].mxu0 }
 0x3fc   :  { %v2518_v60 = vpop.f32.mrb[115].mxu0 }
 0x3fd   :  { %v2519_v61 = vadd.f32 %v2518_v60, %v2517_v59 }
 0x3ff   :  { %v1320_v62 = vpack.c.bf16 %v2519_v61, %v2516_v57 }
 0x401   :  { %v2520_v63 = vpop.f32.mrb[116].mxu0  ;;  %2770 = vmatprep.mubr.bf16.mxu1 %v1320_v62 }
 0x402   :  { %v2521_v14 = vpop.f32.mrb[117].mxu0 }
 0x403   :  { %v2522_v15 = vadd.f32 %v2521_v14, %v2520_v63  ;;  %v2523_v29 = vpop.f32.mrb[118].mxu0 }
 0x404   :  { %v2524_v31 = vpop.f32.mrb[119].mxu0 }
 0x405   :  { %v2525_v33 = vadd.f32 %v2524_v31, %v2523_v29 }
 0x407   :  { %v1321_v35 = vpack.c.bf16 %v2525_v33, %v2522_v15 }
 0x409   :  { %2771 = vmatmul.mubr.bf16.gmra.mrb[56].mxu1 %v1321_v35  ;;  %v2526_v37 = vpop.f32.mrb[120].mxu0 }
 0x40a   :  { %v2527_v39 = vpop.f32.mrb[121].mxu0 }
 0x40b   :  { %v2528_v41 = vadd.f32 %v2527_v39, %v2526_v37  ;;  %v2529_v51 = vpop.f32.mrb[122].mxu0 }
 0x40c   :  { %v2530_v58 = vpop.f32.mrb[123].mxu0 }
 0x40d   :  { %v2531_v21 = vadd.f32 %v2530_v58, %v2529_v51 }
 0x40f   :  { %v1322_v0 = vpack.c.bf16 %v2531_v21, %v2528_v41 }
 0x411   :  { %v2532_v3 = vpop.f32.mrb[124].mxu0  ;;  %2774 = vmatprep.mubr.bf16.mxu1 %v1322_v0 }
 0x412   :  { %v2533_v16 = vpop.f32.mrb[125].mxu0 }
 0x413   :  { %v2534_v4 = vadd.f32 %v2533_v16, %v2532_v3  ;;  %v2535_v5 = vpop.f32.mrb[126].mxu0 }
 0x414   :  { %v2536_v6 = vpop.f32.mrb[127].mxu0 }
 0x415   :  { %v2537_v7 = vadd.f32 %v2536_v6, %v2535_v5 }
 0x417   :  { %v1323_v8 = vpack.c.bf16 %v2537_v7, %v2534_v4 }
 0x419   :  { %2775 = vmatmul.mubr.bf16.gmra.mrb[60].mxu1 %v1323_v8 }
 0x47c   :  { %v2748_v10 = vpop.f32.mrb[32].mxu1 }
 0x47d   :  { %v1783_v12 = vadd.f32 %v2748_v10, %v3516_v9  ;;  %v1647_v13 = vpop.f32.mrb[33].mxu1 }
 0x47e   :  { %v1781_v11 = vadd.f32 %v3516_v9, %v1647_v13  ;;  %v2749_v55 = vpop.f32.mrb[34].mxu1 }
 0x47f   :  { %v1784_v2 = vadd.f32 %v2749_v55, %v3516_v9  ;;  %v1650_v22 = vpop.f32.mrb[35].mxu1  ;;  %v1815_v23 = vmax.f32 %v1783_v12, 0.0 }
 0x480   :  { %v1782_v54 = vadd.f32 %v3516_v9, %v1650_v22  ;;  %v1813_v27 = vmax.f32 %v1781_v11, 0.0 }
 0x481   :  { %v1816_v1 = vmax.f32 %v1784_v2, 0.0 }
 0x482   :  { %v1814_v25 = vmax.f32 %v1782_v54, 0.0 }
 0x483   :  { %v2179_v17 = vpack.c.bf16 %v1816_v1, %v1815_v23 }
 0x484   :  { %v2174_v18 = vpack.c.bf16 %v1814_v25, %v1813_v27 }
 0x485   :  { %2251 = vst [vmem:[#allocation13 + $0x8] sm:$0xff] %v2179_v17  }
 0x486   :  { %2175 = vst [vmem:[#allocation13] sm:$0xff] %v2174_v18  }
 0x48c   :  { %v2752_v19 = vpop.f32.mrb[36].mxu1 }
 0x48d   :  { %v1787_v20 = vadd.f32 %v2752_v19, %v3516_v9  ;;  %v1663_v24 = vpop.f32.mrb[37].mxu1 }
 0x48e   :  { %v1785_v26 = vadd.f32 %v3516_v9, %v1663_v24  ;;  %v2753_v28 = vpop.f32.mrb[38].mxu1 }
 0x48f   :  { %v1788_v30 = vadd.f32 %v2753_v28, %v3516_v9  ;;  %v1666_v32 = vpop.f32.mrb[39].mxu1  ;;  %v1819_v36 = vmax.f32 %v1787_v20, 0.0 }
 0x490   :  { %v1786_v34 = vadd.f32 %v3516_v9, %v1666_v32  ;;  %v1817_v40 = vmax.f32 %v1785_v26, 0.0 }
 0x491   :  { %v1820_v38 = vmax.f32 %v1788_v30, 0.0 }
 0x492   :  { %v1818_v42 = vmax.f32 %v1786_v34, 0.0 }
 0x493   :  { %v2189_v43 = vpack.c.bf16 %v1820_v38, %v1819_v36 }
 0x494   :  { %v2184_v44 = vpack.c.bf16 %v1818_v42, %v1817_v40 }
 0x495   :  { %2253 = vst [vmem:[#allocation13 + $0x18] sm:$0xff] %v2189_v43  }
 0x496   :  { %2252 = vst [vmem:[#allocation13 + $0x10] sm:$0xff] %v2184_v44  }
 0x49c   :  { %v2756_v45 = vpop.f32.mrb[40].mxu1 }
 0x49d   :  { %v1791_v46 = vadd.f32 %v2756_v45, %v3516_v9  ;;  %v1679_v47 = vpop.f32.mrb[41].mxu1 }
 0x49e   :  { %v1789_v48 = vadd.f32 %v3516_v9, %v1679_v47  ;;  %v2757_v49 = vpop.f32.mrb[42].mxu1 }
 0x49f   :  { %v1792_v50 = vadd.f32 %v2757_v49, %v3516_v9  ;;  %v1682_v52 = vpop.f32.mrb[43].mxu1  ;;  %v1823_v56 = vmax.f32 %v1791_v46, 0.0 }
 0x4a0   :  { %v1790_v53 = vadd.f32 %v3516_v9, %v1682_v52  ;;  %v1821_v59 = vmax.f32 %v1789_v48, 0.0 }
 0x4a1   :  { %v1824_v57 = vmax.f32 %v1792_v50, 0.0 }
 0x4a2   :  { %v1822_v60 = vmax.f32 %v1790_v53, 0.0 }
 0x4a3   :  { %v2199_v61 = vpack.c.bf16 %v1824_v57, %v1823_v56 }
 0x4a4   :  { %v2194_v62 = vpack.c.bf16 %v1822_v60, %v1821_v59 }
 0x4a5   :  { %2255 = vst [vmem:[#allocation13 + $0x28] sm:$0xff] %v2199_v61  }
 0x4a6   :  { %2254 = vst [vmem:[#allocation13 + $0x20] sm:$0xff] %v2194_v62  }
 0x4ac   :  { %v2760_v63 = vpop.f32.mrb[44].mxu1 }
 0x4ad   :  { %v1795_v14 = vadd.f32 %v2760_v63, %v3516_v9  ;;  %v1695_v15 = vpop.f32.mrb[45].mxu1 }
 0x4ae   :  { %v1793_v29 = vadd.f32 %v3516_v9, %v1695_v15  ;;  %v2761_v31 = vpop.f32.mrb[46].mxu1 }
 0x4af   :  { %v1796_v33 = vadd.f32 %v2761_v31, %v3516_v9  ;;  %v1698_v35 = vpop.f32.mrb[47].mxu1  ;;  %v1827_v39 = vmax.f32 %v1795_v14, 0.0 }
 0x4b0   :  { %v1794_v37 = vadd.f32 %v3516_v9, %v1698_v35  ;;  %v1825_v51 = vmax.f32 %v1793_v29, 0.0 }
 0x4b1   :  { %v1828_v41 = vmax.f32 %v1796_v33, 0.0 }
 0x4b2   :  { %v1826_v58 = vmax.f32 %v1794_v37, 0.0 }
 0x4b3   :  { %v2209_v21 = vpack.c.bf16 %v1828_v41, %v1827_v39 }
 0x4b4   :  { %v2204_v0 = vpack.c.bf16 %v1826_v58, %v1825_v51 }
 0x4b5   :  { %2257 = vst [vmem:[#allocation13 + $0x38] sm:$0xff] %v2209_v21  }
 0x4b6   :  { %2256 = vst [vmem:[#allocation13 + $0x30] sm:$0xff] %v2204_v0  }
 0x4bc   :  { %v2764_v3 = vpop.f32.mrb[48].mxu1 }
 0x4bd   :  { %v1799_v16 = vadd.f32 %v2764_v3, %v3516_v9  ;;  %v1711_v4 = vpop.f32.mrb[49].mxu1 }
 0x4be   :  { %v1797_v5 = vadd.f32 %v3516_v9, %v1711_v4  ;;  %v2765_v6 = vpop.f32.mrb[50].mxu1 }
 0x4bf   :  { %v1800_v7 = vadd.f32 %v2765_v6, %v3516_v9  ;;  %v1714_v8 = vpop.f32.mrb[51].mxu1  ;;  %v1831_v12 = vmax.f32 %v1799_v16, 0.0 }
 0x4c0   :  { %v1798_v10 = vadd.f32 %v3516_v9, %v1714_v8  ;;  %v1829_v11 = vmax.f32 %v1797_v5, 0.0 }
 0x4c1   :  { %v1832_v13 = vmax.f32 %v1800_v7, 0.0 }
 0x4c2   :  { %v1830_v55 = vmax.f32 %v1798_v10, 0.0 }
 0x4c3   :  { %v2219_v2 = vpack.c.bf16 %v1832_v13, %v1831_v12 }
 0x4c4   :  { %v2214_v22 = vpack.c.bf16 %v1830_v55, %v1829_v11 }
 0x4c5   :  { %2259 = vst [vmem:[#allocation13 + $0x48] sm:$0xff] %v2219_v2  }
 0x4c6   :  { %2258 = vst [vmem:[#allocation13 + $0x40] sm:$0xff] %v2214_v22  }
 0x4cc   :  { %v2768_v54 = vpop.f32.mrb[52].mxu1 }
 0x4cd   :  { %v1803_v23 = vadd.f32 %v2768_v54, %v3516_v9  ;;  %v1727_v1 = vpop.f32.mrb[53].mxu1 }
 0x4ce   :  { %v1801_v27 = vadd.f32 %v3516_v9, %v1727_v1  ;;  %v2769_v25 = vpop.f32.mrb[54].mxu1 }
 0x4cf   :  { %v1804_v17 = vadd.f32 %v2769_v25, %v3516_v9  ;;  %v1730_v18 = vpop.f32.mrb[55].mxu1  ;;  %v1835_v20 = vmax.f32 %v1803_v23, 0.0 }
 0x4d0   :  { %v1802_v19 = vadd.f32 %v3516_v9, %v1730_v18  ;;  %v1833_v26 = vmax.f32 %v1801_v27, 0.0 }
 0x4d1   :  { %v1836_v24 = vmax.f32 %v1804_v17, 0.0 }
 0x4d2   :  { %v1834_v28 = vmax.f32 %v1802_v19, 0.0 }
 0x4d3   :  { %v2229_v30 = vpack.c.bf16 %v1836_v24, %v1835_v20 }
 0x4d4   :  { %v2224_v32 = vpack.c.bf16 %v1834_v28, %v1833_v26 }
 0x4d5   :  { %2261 = vst [vmem:[#allocation13 + $0x58] sm:$0xff] %v2229_v30  }
 0x4d6   :  { %2260 = vst [vmem:[#allocation13 + $0x50] sm:$0xff] %v2224_v32  }
 0x4dc   :  { %v2772_v34 = vpop.f32.mrb[56].mxu1 }
 0x4dd   :  { %v1807_v36 = vadd.f32 %v2772_v34, %v3516_v9  ;;  %v1743_v38 = vpop.f32.mrb[57].mxu1 }
 0x4de   :  { %v1805_v40 = vadd.f32 %v3516_v9, %v1743_v38  ;;  %v2773_v42 = vpop.f32.mrb[58].mxu1 }
 0x4df   :  { %v1808_v43 = vadd.f32 %v2773_v42, %v3516_v9  ;;  %v1746_v44 = vpop.f32.mrb[59].mxu1  ;;  %v1839_v46 = vmax.f32 %v1807_v36, 0.0 }
 0x4e0   :  { %v1806_v45 = vadd.f32 %v3516_v9, %v1746_v44  ;;  %v1837_v48 = vmax.f32 %v1805_v40, 0.0 }
 0x4e1   :  { %v1840_v47 = vmax.f32 %v1808_v43, 0.0 }
 0x4e2   :  { %v1838_v49 = vmax.f32 %v1806_v45, 0.0 }
 0x4e3   :  { %v2239_v50 = vpack.c.bf16 %v1840_v47, %v1839_v46 }
 0x4e4   :  { %v2234_v52 = vpack.c.bf16 %v1838_v49, %v1837_v48 }
 0x4e5   :  { %2263 = vst [vmem:[#allocation13 + $0x68] sm:$0xff] %v2239_v50  }
 0x4e6   :  { %2262 = vst [vmem:[#allocation13 + $0x60] sm:$0xff] %v2234_v52  }
 0x4ec   :  { %v2776_v53 = vpop.f32.mrb[60].mxu1 }
 0x4ed   :  { %v1811_v56 = vadd.f32 %v2776_v53, %v3516_v9  ;;  %v1759_v57 = vpop.f32.mrb[61].mxu1 }
 0x4ee   :  { %v1809_v59 = vadd.f32 %v3516_v9, %v1759_v57  ;;  %v2777_v60 = vpop.f32.mrb[62].mxu1 }
 0x4ef   :  { %v1812_v61 = vadd.f32 %v2777_v60, %v3516_v9  ;;  %v1762_v62 = vpop.f32.mrb[63].mxu1  ;;  %v1843_v14 = vmax.f32 %v1811_v56, 0.0 }
 0x4f0   :  { %v1810_v63 = vadd.f32 %v3516_v9, %v1762_v62  ;;  %v1841_v29 = vmax.f32 %v1809_v59, 0.0 }
 0x4f1   :  { %v1844_v15 = vmax.f32 %v1812_v61, 0.0 }
 0x4f2   :  { %v1842_v31 = vmax.f32 %v1810_v63, 0.0 }
 0x4f3   :  { %v2249_v33 = vpack.c.bf16 %v1844_v15, %v1843_v14 }
 0x4f4   :  { %v2244_v35 = vpack.c.bf16 %v1842_v31, %v1841_v29 }
 0x4f5   :  { %2265 = vst [vmem:[#allocation13 + $0x78] sm:$0xff] %v2249_v33  }
 0x4f6   :  { %2264 = vst [vmem:[#allocation13 + $0x70] sm:$0xff] %v2244_v35  }
 0x4f7   :  { %3092 = shalt.err (!%p3089_p10)
}
 0x4f8   :  { %s3093_s18 = scalar_lea.hbm %s3573_s8, 2048 }
 0x4f9   :  { %p3094_p11 = scmp.ne.s32.totalorder %s3573_s8, %s3093_s18  ;;  %p3097_p12 = scmp.lt.u32.totalorder %s3093_s18, %s3573_s8 }
 0x4fb   :  { %p3099_p13 = pnand %p3097_p12, %p3094_p11 }
 0x4fd   :  { %3102 = shalt.err (!%p3099_p13)
}
 0x4fe   :  { %2016 = dma.vmem_to_hbm [thread:$0]  %s2011_s12, 2048, %s3573_s8, [#allocation4], %s3114_s15, %s3114_s15, %s3115_s16  }
 0x4ff   :  { %3111 = dma.done.wait [#allocation4], 2048  }
 0x500   :  { %3112 = vsyncadd [#allocation4], 4294965248 }
 0x501   :  { %2020 = vsyncpa [#allocation3], 1 }
 0x502   :  { %2021 = vsyncpa [#allocation6], 1 }
 0x503   :  { %2022 = vsyncpa [#allocation9], 1 }
 0x504   :  { %2023 = vsyncpa [#allocation12], 1 }
 0x505   :  { %2024 = vsyncpa [#allocation4], 1 }

</bundles_post_ra>
